<compile_context>
chip_gen: v7x
topology: tpu7x:2x2x1
jax: 0.10.0
libtpu: 0.0.40
codegen_flags: <defaults>
</compile_context>

<pallas_src>
import functools
import math

import jax
import jax.numpy as jnp
from jax import lax
from jax.experimental import pallas as pl
from jax.experimental.pallas import tpu as pltpu

# --- model hyperparameters (the original reads these from a `params` global) ---
EMBED_SIZE = 32
NHEAD = 4
DIM_FEEDFORWARD = 64
DECODER_LAYERS = 2
DROPOUT = 0.0
HEAD_DIM = EMBED_SIZE // NHEAD
LN_EPS = 1e-5

# rows of the packed per-layer vector array (each row padded to 128 lanes)
_VP_SA_IN_B = 0    # width 3*E
_VP_SA_OUT_B = 1   # width E
_VP_FF1_B = 2      # width F
_VP_FF2_B = 3      # width E
_VP_LN1_W = 4
_VP_LN1_B = 5
_VP_LN2_W = 6
_VP_LN2_B = 7
_VP_LN3_W = 8
_VP_LN3_B = 9
_VP_CA_CONST = 10
_VP_ROWS = 11

_NEG_BIG = -1e30   # bias for lane-padded (fake) vocab columns


# ----------------------------- in-kernel helpers ------------------------------
def _layer_norm(v, g, b):
    mu = jnp.mean(v, axis=-1, keepdims=True)
    var = jnp.mean(jnp.square(v - mu), axis=-1, keepdims=True)
    return (v - mu) * lax.rsqrt(var + LN_EPS) * g + b


# --------------------------------- the kernel ---------------------------------
def lm_loss_kernel(x_ref, mask_ref, tgt_ref,
                   sa_in_wT_ref, sa_out_wT_ref, ff1_wT_ref, ff2_wT_ref,
                   vec_ref, out_w_ref, out_b_ref,
                   loss_ref, scores_ref):
    N, E = x_ref.shape                     # N = B*S (flattened), E = embed
    H, D, F = NHEAD, HEAD_DIM, DIM_FEEDFORWARD
    scale = 1.0 / math.sqrt(D)

    x = x_ref[...]                         # (N, E) f32
    mask = mask_ref[...]                   # (N, N) f32 additive (causal + pad)

    for l in range(DECODER_LAYERS):        # static unroll over layers
        vp = vec_ref[l]                    # (11, 128) packed small params (f32)
        sa_in_b = vp[_VP_SA_IN_B:_VP_SA_IN_B + 1, 0:3 * E]
        sa_out_b = vp[_VP_SA_OUT_B:_VP_SA_OUT_B + 1, 0:E]
        ff1_b = vp[_VP_FF1_B:_VP_FF1_B + 1, 0:F]
        ff2_b = vp[_VP_FF2_B:_VP_FF2_B + 1, 0:E]
        ln1_w = vp[_VP_LN1_W:_VP_LN1_W + 1, 0:E]
        ln1_b = vp[_VP_LN1_B:_VP_LN1_B + 1, 0:E]
        ln2_w = vp[_VP_LN2_W:_VP_LN2_W + 1, 0:E]
        ln2_b = vp[_VP_LN2_B:_VP_LN2_B + 1, 0:E]
        ln3_w = vp[_VP_LN3_W:_VP_LN3_W + 1, 0:E]
        ln3_b = vp[_VP_LN3_B:_VP_LN3_B + 1, 0:E]
        ca_const = vp[_VP_CA_CONST:_VP_CA_CONST + 1, 0:E]

        # --- self attention: fused QKV (bf16 MXU, f32 accumulate) ---
        qkv = jnp.dot(x.astype(jnp.bfloat16), sa_in_wT_ref[l],
                      preferred_element_type=jnp.float32) + sa_in_b     # (N, 3E)

        # per-head scores -> aligned stores into the (H*N, N) scratch
        for h in range(H):
            q_h = qkv[:, h * D:(h + 1) * D].astype(jnp.bfloat16)
            k_h = qkv[:, E + h * D:E + (h + 1) * D].astype(jnp.bfloat16)
            s_h = lax.dot_general(q_h, k_h, (((1,), (1,)), ((), ())),
                                  preferred_element_type=jnp.float32)   # (N, N)
            scores_ref[pl.ds(h * N, N), :] = s_h * scale + mask

        # one fused softmax over all heads (f32; reciprocal on the EUP slot)
        s = scores_ref[...]
        m = jnp.max(s, axis=-1, keepdims=True)
        p = jnp.exp(s - m)
        p = p * pl.reciprocal(jnp.sum(p, axis=-1, keepdims=True), approx=True)
        scores_ref[...] = p

        # per-head context + output projection, accumulated (no lane concat)
        sa = jnp.zeros((N, E), jnp.float32)
        for h in range(H):
            p_h = scores_ref[pl.ds(h * N, N), :].astype(jnp.bfloat16)   # (N, N)
            v_h = qkv[:, 2 * E + h * D:2 * E + (h + 1) * D].astype(jnp.bfloat16)
            ctx_h = jnp.dot(p_h, v_h, preferred_element_type=jnp.float32)  # (N, D)
            sa = sa + jnp.dot(ctx_h.astype(jnp.bfloat16),
                              sa_out_wT_ref[l * H + h],
                              preferred_element_type=jnp.float32)       # (N, E)
        sa = sa + sa_out_b
        x = _layer_norm(x + sa, ln1_w, ln1_b)

        # --- cross attention to the all-zero memory == per-layer constant ---
        x = _layer_norm(x + ca_const, ln2_w, ln2_b)

        # --- feed-forward (relu); bf16 MXU operands, f32 elementwise ---
        h1 = jnp.maximum(
            jnp.dot(x.astype(jnp.bfloat16), ff1_wT_ref[l],
                    preferred_element_type=jnp.float32) + ff1_b, 0.0)
        ff = jnp.dot(h1.astype(jnp.bfloat16), ff2_wT_ref[l],
                     preferred_element_type=jnp.float32) + ff2_b
        x = _layer_norm(x + ff, ln3_w, ln3_b)

    # --- output projection + masked cross entropy (shift-by-one LM loss) ---
    # out_w is lane-padded to 128; padded bias columns are -1e30 so they never
    # affect max / lse / picked.
    logits = jnp.dot(x.astype(jnp.bfloat16), out_w_ref[...],
                     preferred_element_type=jnp.float32) + out_b_ref[...]  # (N, Vp)

    onehot = tgt_ref[...]                                   # (N, Vp), 0 on pad rows
    valid = jnp.sum(onehot, axis=-1, keepdims=True)         # (N, 1) 1.0 / 0.0
    mx = jnp.max(logits, axis=-1, keepdims=True)
    lse = mx + jnp.log(jnp.sum(jnp.exp(logits - mx), axis=-1, keepdims=True))
    picked = jnp.sum(logits * onehot, axis=-1, keepdims=True)
    nll = jnp.where(valid > 0.0, lse - picked, 0.0)          # (N, 1)

    total = jnp.sum(nll, axis=0, keepdims=True)               # (1, 1)
    count = jnp.sum(valid, axis=0, keepdims=True)              # (1, 1)
    # NOTE: unguarded division matches F.cross_entropy (all-ignored batch -> NaN).
    loss_ref[...] = total / count


# ----------------------------------- glue -------------------------------------
def prepare_padded_batch(source, pad_idx):
    m = max(len(s) for s in source)
    return jnp.asarray([list(s) + (m - len(s)) * [pad_idx] for s in source],
                       dtype=jnp.int32)


def positional_encoding(seq_len, embed_size):
    pos = jnp.arange(seq_len, dtype=jnp.float32)[:, None]
    div = jnp.exp(jnp.arange(0, embed_size, 2, dtype=jnp.float32)
                  * (-math.log(10000.0) / embed_size))
    pe = jnp.zeros((seq_len, embed_size), jnp.float32)
    pe = pe.at[:, 0::2].set(jnp.sin(pos * div))
    pe = pe.at[:, 1::2].set(jnp.cos(pos * div))
    return pe


def square_subsequent_mask(seq_len):
    # Exact reproduction of the module (triu INCLUDES the diagonal -> -inf there).
    m = jnp.triu(jnp.ones((seq_len, seq_len), jnp.float32)) == 1
    return jnp.where(m, -jnp.inf, 0.0).astype(jnp.float32)


def init_params(key, vocab_size, pad_idx):
    E, F_, L, V = EMBED_SIZE, DIM_FEEDFORWARD, DECODER_LAYERS, vocab_size
    ks = jax.random.split(key, 16)

    def nrm(k, shape, scale=0.05):
        return (scale * jax.random.normal(k, shape)).astype(jnp.float32)

    emb = nrm(ks[0], (V, E), 1.0).at[pad_idx].set(0.0)   # padding_idx row zeroed
    return dict(
        embedding=emb,
        sa_in_wT=nrm(ks[1], (L, E, 3 * E)), sa_in_b=nrm(ks[2], (L, 1, 3 * E)),
        sa_out_wT=nrm(ks[3], (L, E, E)),    sa_out_b=nrm(ks[4], (L, 1, E)),
        ca_in_wT=nrm(ks[5], (L, E, 3 * E)), ca_in_b=nrm(ks[6], (L, 1, 3 * E)),
        ca_out_wT=nrm(ks[7], (L, E, E)),    ca_out_b=nrm(ks[8], (L, 1, E)),
        ff1_wT=nrm(ks[9], (L, E, F_)),      ff1_b=nrm(ks[10], (L, 1, F_)),
        ff2_wT=nrm(ks[11], (L, F_, E)),     ff2_b=nrm(ks[12], (L, 1, E)),
        ln1_w=jnp.ones((L, 1, E), jnp.float32), ln1_b=jnp.zeros((L, 1, E), jnp.float32),
        ln2_w=jnp.ones((L, 1, E), jnp.float32), ln2_b=jnp.zeros((L, 1, E), jnp.float32),
        ln3_w=jnp.ones((L, 1, E), jnp.float32), ln3_b=jnp.zeros((L, 1, E), jnp.float32),
        out_wT=nrm(ks[13], (E, V)),         out_b=nrm(ks[14], (1, V)),
    )


def _pad_lanes_128(a):
    """(L, 1, w) -> (L, 1, 128) zero-padded along the last (lane) dim."""
    return jnp.pad(a, ((0, 0), (0, 0), (0, 128 - a.shape[-1])))


def pack_params(params, vocab_size):
    """One-time (hoisted) parameter packing: bf16 MXU weights, lane-dense vocab,
    per-layer small-vector pack, and the cross-attention constant."""
    E, L, H, D = EMBED_SIZE, DECODER_LAYERS, NHEAD, HEAD_DIM
    Vp = ((vocab_size + 127) // 128) * 128

    # cross-attention to the zero, length-1 memory is a per-layer constant:
    #   softmax over one key == 1, k/v are just biases  ->  bv @ W_out + b_out
    bv = params["ca_in_b"][:, :, 2 * E:3 * E]                          # (L, 1, E)
    ca_const = jnp.einsum('lxe,leo->lxo', bv, params["ca_out_wT"]) \
        + params["ca_out_b"]                                           # (L, 1, E)

    vec_pack = jnp.concatenate([
        _pad_lanes_128(params["sa_in_b"]), _pad_lanes_128(params["sa_out_b"]),
        _pad_lanes_128(params["ff1_b"]),   _pad_lanes_128(params["ff2_b"]),
        _pad_lanes_128(params["ln1_w"]),   _pad_lanes_128(params["ln1_b"]),
        _pad_lanes_128(params["ln2_w"]),   _pad_lanes_128(params["ln2_b"]),
        _pad_lanes_128(params["ln3_w"]),   _pad_lanes_128(params["ln3_b"]),
        _pad_lanes_128(ca_const)], axis=1)                             # (L, 11, 128)
    assert vec_pack.shape == (L, _VP_ROWS, 128)

    # per-head output projection: (L, E, E) -> (L*H, D, E) so the kernel can
    # accumulate sum_h (P_h @ V_h) @ W_out[l,h] without a lane concatenate.
    sa_out_heads = params["sa_out_wT"].reshape(L, H, D, E).reshape(L * H, D, E)

    # lane-dense output projection: pad vocab to Vp; padded bias columns get a
    # large negative value so they never affect max / log-sum-exp / picked.
    out_w = jnp.pad(params["out_wT"], ((0, 0), (0, Vp - vocab_size)))
    out_b = jnp.pad(params["out_b"], ((0, 0), (0, Vp - vocab_size)),
                    constant_values=_NEG_BIG)

    bf16 = jnp.bfloat16
    return dict(
        embedding=params["embedding"],                 # f32 (V, E)
        sa_in_wT=params["sa_in_wT"].astype(bf16),      # (L, E, 3E)
        sa_out_heads=sa_out_heads.astype(bf16),        # (L*H, D, E)
        ff1_wT=params["ff1_wT"].astype(bf16),          # (L, E, F)
        ff2_wT=params["ff2_wT"].astype(bf16),          # (L, F, E)
        vec_pack=vec_pack.astype(jnp.float32),         # (L, 11, 128)
        out_w=out_w.astype(bf16),                      # (E, Vp)
        out_b=out_b.astype(jnp.float32),               # (1, Vp)
    )


@functools.partial(jax.jit, static_argnums=(2,))
def _lm_loss_from_padded(packed, padded, pad_idx):
    """Jitted per-call path: embedding gather, pos-enc, mask / one-hot build,
    and the Pallas kernel call."""
    E, H = EMBED_SIZE, NHEAD
    B, S = padded.shape
    BS = B * S
    Vp = packed["out_w"].shape[1]

    # embeddings + positional encoding, flattened to (B*S, E)
    emb = packed["embedding"][padded]                                  # (B, S, E)
    x = (emb + positional_encoding(S, E)[None]).astype(jnp.float32).reshape(BS, E)

    # block-diagonal additive mask (causal + key padding; off-block = -inf)
    tgt_mask = square_subsequent_mask(S)                               # (S, S)
    kpm = jnp.where(padded == pad_idx, -jnp.inf, 0.0).astype(jnp.float32)  # (B, S)
    rows = jnp.arange(BS)
    same_block = (rows[:, None] // S) == (rows[None, :] // S)
    add_mask = jnp.where(same_block, jnp.tile(tgt_mask, (B, B)), -jnp.inf)
    add_mask = (add_mask + kpm.reshape(-1)[None, :]).astype(jnp.float32)   # (BS, BS)

    # shift-by-one targets as a lane-dense one-hot; pad rows are all-zero so the
    # kernel recovers the valid flag as the row-sum.
    targets = padded[:, 1:]                                            # (B, S-1)
    tgt_full = jnp.concatenate(
        [targets, jnp.full((B, 1), pad_idx, jnp.int32)], axis=1).reshape(-1)  # (BS,)
    valid = tgt_full != pad_idx
    onehot = ((tgt_full[:, None] == jnp.arange(Vp)[None, :])
              & valid[:, None]).astype(jnp.float32)                    # (BS, Vp)

    inputs = (x, add_mask, onehot,
              packed["sa_in_wT"], packed["sa_out_heads"],
              packed["ff1_wT"], packed["ff2_wT"],
              packed["vec_pack"], packed["out_w"], packed["out_b"])

    loss = pl.pallas_call(
        lm_loss_kernel,
        out_shape=jax.ShapeDtypeStruct((1, 1), jnp.float32),
        in_specs=[pl.BlockSpec(memory_space=pltpu.MemorySpace.VMEM)] * len(inputs),
        out_specs=pl.BlockSpec(memory_space=pltpu.MemorySpace.VMEM),
        scratch_shapes=[pltpu.VMEM((H * BS, BS), jnp.float32)],
    )(*inputs)
    return loss[0, 0]


def language_model_loss(packed, source, pad_idx):
    padded = prepare_padded_batch(source, pad_idx)                     # (B, S) int32
    return _lm_loss_from_padded(packed, padded, pad_idx)


# ----------------------------------- main --------------------------------------
if __name__ == "__main__":
    word2ind = {"<S>": 0, "</S>": 1, "<UNK>": 2, "<PAD>": 3, "<TRANS>": 4,
                "the": 5, "cat": 6, "sat": 7, "on": 8, "mat": 9,
                "dog": 10, "ran": 11, "far": 12}
    V = len(word2ind)                       # 13
    PAD = word2ind["<PAD>"]
    START = word2ind["<S>"]
    END = word2ind["</S>"]

    key = jax.random.PRNGKey(0)
    kp, k1, k2 = jax.random.split(key, 3)
    body1 = jax.random.randint(k1, (6,), 5, V)
    body2 = jax.random.randint(k2, (4,), 5, V)
    source = [[START] + [int(t) for t in body1] + [END],    # length 8
              [START] + [int(t) for t in body2] + [END]]    # length 6 -> padded to 8

    params = init_params(kp, V, PAD)
    packed = pack_params(params, V)                          # hoisted, one-time
    loss = language_model_loss(packed, source, PAD)
    loss = jax.block_until_ready(loss)
    assert loss.shape == () and loss.dtype == jnp.float32
    # loss may be NaN — this exactly mirrors the PyTorch module, whose causal mask
    # also masks the diagonal (first query row fully masked -> NaN in softmax).
    print("KERNEL_OK")
</pallas_src>

<mosaic_0001>
module attributes {stable_mosaic.version = 11 : i64} {
  func.func @lm_loss_kernel(%arg0: memref<16x32xf32, #tpu.memory_space<vmem>>, %arg1: memref<16x16xf32, #tpu.memory_space<vmem>>, %arg2: memref<16x128xf32, #tpu.memory_space<vmem>>, %arg3: memref<2x32x96xbf16, #tpu.memory_space<vmem>>, %arg4: memref<8x8x32xbf16, #tpu.memory_space<vmem>>, %arg5: memref<2x32x64xbf16, #tpu.memory_space<vmem>>, %arg6: memref<2x64x32xbf16, #tpu.memory_space<vmem>>, %arg7: memref<2x11x128xf32, #tpu.memory_space<vmem>>, %arg8: memref<32x128xbf16, #tpu.memory_space<vmem>>, %arg9: memref<1x128xf32, #tpu.memory_space<vmem>>, %arg10: memref<1x1xf32, #tpu.memory_space<vmem>>, %arg11: memref<64x16xf32, #tpu.memory_space<vmem>>) attributes {dimension_semantics = [], scalar_prefetch = 0 : i64, scratch_operands = 1 : i64, tpu.core_type = #tpu.core_type<tc>} {
    %c0 = arith.constant 0 : index
    %c0_0 = arith.constant 0 : index
    %0 = vector.load %arg0[%c0, %c0_0] : memref<16x32xf32, #tpu.memory_space<vmem>>, vector<16x32xf32>
    %c0_1 = arith.constant 0 : index
    %c0_2 = arith.constant 0 : index
    %1 = vector.load %arg1[%c0_1, %c0_2] : memref<16x16xf32, #tpu.memory_space<vmem>>, vector<16x16xf32>
    %c0_3 = arith.constant 0 : index
    %c0_4 = arith.constant 0 : index
    %c0_5 = arith.constant 0 : index
    %2 = vector.load %arg7[%c0_3, %c0_4, %c0_5] : memref<2x11x128xf32, #tpu.memory_space<vmem>>, vector<1x11x128xf32>
    %3 = vector.shape_cast %2 : vector<1x11x128xf32> to vector<11x128xf32>
    %4 = vector.extract_strided_slice %3 {offsets = [0, 0], sizes = [1, 96], strides = [1, 1]} : vector<11x128xf32> to vector<1x96xf32>
    %5 = vector.extract_strided_slice %3 {offsets = [1, 0], sizes = [1, 32], strides = [1, 1]} : vector<11x128xf32> to vector<1x32xf32>
    %6 = vector.extract_strided_slice %3 {offsets = [2, 0], sizes = [1, 64], strides = [1, 1]} : vector<11x128xf32> to vector<1x64xf32>
    %7 = vector.extract_strided_slice %3 {offsets = [3, 0], sizes = [1, 32], strides = [1, 1]} : vector<11x128xf32> to vector<1x32xf32>
    %8 = vector.extract_strided_slice %3 {offsets = [4, 0], sizes = [1, 32], strides = [1, 1]} : vector<11x128xf32> to vector<1x32xf32>
    %9 = vector.extract_strided_slice %3 {offsets = [5, 0], sizes = [1, 32], strides = [1, 1]} : vector<11x128xf32> to vector<1x32xf32>
    %10 = vector.extract_strided_slice %3 {offsets = [6, 0], sizes = [1, 32], strides = [1, 1]} : vector<11x128xf32> to vector<1x32xf32>
    %11 = vector.extract_strided_slice %3 {offsets = [7, 0], sizes = [1, 32], strides = [1, 1]} : vector<11x128xf32> to vector<1x32xf32>
    %12 = vector.extract_strided_slice %3 {offsets = [8, 0], sizes = [1, 32], strides = [1, 1]} : vector<11x128xf32> to vector<1x32xf32>
    %13 = vector.extract_strided_slice %3 {offsets = [9, 0], sizes = [1, 32], strides = [1, 1]} : vector<11x128xf32> to vector<1x32xf32>
    %14 = vector.extract_strided_slice %3 {offsets = [10, 0], sizes = [1, 32], strides = [1, 1]} : vector<11x128xf32> to vector<1x32xf32>
    %15 = arith.truncf %0 : vector<16x32xf32> to vector<16x32xbf16>
    %c0_6 = arith.constant 0 : index
    %c0_7 = arith.constant 0 : index
    %c0_8 = arith.constant 0 : index
    %16 = vector.load %arg3[%c0_6, %c0_7, %c0_8] : memref<2x32x96xbf16, #tpu.memory_space<vmem>>, vector<1x32x96xbf16>
    %17 = vector.shape_cast %16 : vector<1x32x96xbf16> to vector<32x96xbf16>
    %cst = arith.constant dense<0.000000e+00> : vector<16x96xf32>
    %18 = tpu.matmul %15, %17, %cst {dimension_numbers = #tpu.dot_dimension_numbers<[1], [0], [0], [1], [0, 0, 1, 1], [], []>} : vector<16x32xbf16>, vector<32x96xbf16>, vector<16x96xf32> -> vector<16x96xf32>
    %19 = vector.broadcast %4 : vector<1x96xf32> to vector<16x96xf32>
    %20 = arith.addf %18, %19 : vector<16x96xf32>
    %21 = vector.extract_strided_slice %20 {offsets = [0, 0], sizes = [16, 8], strides = [1, 1]} : vector<16x96xf32> to vector<16x8xf32>
    %22 = arith.truncf %21 : vector<16x8xf32> to vector<16x8xbf16>
    %23 = vector.extract_strided_slice %20 {offsets = [0, 32], sizes = [16, 8], strides = [1, 1]} : vector<16x96xf32> to vector<16x8xf32>
    %24 = arith.truncf %23 : vector<16x8xf32> to vector<16x8xbf16>
    %cst_9 = arith.constant dense<0.000000e+00> : vector<16x16xf32>
    %25 = tpu.matmul %22, %24, %cst_9 {dimension_numbers = #tpu.dot_dimension_numbers<[1], [1], [0], [0], [0, 0, 1, 0], [], []>} : vector<16x8xbf16>, vector<16x8xbf16>, vector<16x16xf32> -> vector<16x16xf32>
    %cst_10 = arith.constant 0.353553385 : f32
    %26 = vector.broadcast %cst_10 : f32 to vector<16x16xf32>
    %27 = arith.mulf %25, %26 : vector<16x16xf32>
    %28 = arith.addf %27, %1 : vector<16x16xf32>
    %c0_11 = arith.constant 0 : index
    %c0_12 = arith.constant 0 : index
    %29 = vector.load %arg11[%c0_11, %c0_12] : memref<64x16xf32, #tpu.memory_space<vmem>>, vector<16x16xf32>
    tpu.vector_store %arg11[%c0_11, %c0_12], %28 {strides = array<i32>} : memref<64x16xf32, #tpu.memory_space<vmem>>, vector<16x16xf32>,
    %30 = vector.extract_strided_slice %20 {offsets = [0, 8], sizes = [16, 8], strides = [1, 1]} : vector<16x96xf32> to vector<16x8xf32>
    %31 = arith.truncf %30 : vector<16x8xf32> to vector<16x8xbf16>
    %32 = vector.extract_strided_slice %20 {offsets = [0, 40], sizes = [16, 8], strides = [1, 1]} : vector<16x96xf32> to vector<16x8xf32>
    %33 = arith.truncf %32 : vector<16x8xf32> to vector<16x8xbf16>
    %cst_13 = arith.constant dense<0.000000e+00> : vector<16x16xf32>
    %34 = tpu.matmul %31, %33, %cst_13 {dimension_numbers = #tpu.dot_dimension_numbers<[1], [1], [0], [0], [0, 0, 1, 0], [], []>} : vector<16x8xbf16>, vector<16x8xbf16>, vector<16x16xf32> -> vector<16x16xf32>
    %cst_14 = arith.constant 0.353553385 : f32
    %35 = vector.broadcast %cst_14 : f32 to vector<16x16xf32>
    %36 = arith.mulf %34, %35 : vector<16x16xf32>
    %37 = arith.addf %36, %1 : vector<16x16xf32>
    %c16 = arith.constant 16 : index
    %c0_15 = arith.constant 0 : index
    %38 = vector.load %arg11[%c16, %c0_15] : memref<64x16xf32, #tpu.memory_space<vmem>>, vector<16x16xf32>
    tpu.vector_store %arg11[%c16, %c0_15], %37 {strides = array<i32>} : memref<64x16xf32, #tpu.memory_space<vmem>>, vector<16x16xf32>,
    %39 = vector.extract_strided_slice %20 {offsets = [0, 16], sizes = [16, 8], strides = [1, 1]} : vector<16x96xf32> to vector<16x8xf32>
    %40 = arith.truncf %39 : vector<16x8xf32> to vector<16x8xbf16>
    %41 = vector.extract_strided_slice %20 {offsets = [0, 48], sizes = [16, 8], strides = [1, 1]} : vector<16x96xf32> to vector<16x8xf32>
    %42 = arith.truncf %41 : vector<16x8xf32> to vector<16x8xbf16>
    %cst_16 = arith.constant dense<0.000000e+00> : vector<16x16xf32>
    %43 = tpu.matmul %40, %42, %cst_16 {dimension_numbers = #tpu.dot_dimension_numbers<[1], [1], [0], [0], [0, 0, 1, 0], [], []>} : vector<16x8xbf16>, vector<16x8xbf16>, vector<16x16xf32> -> vector<16x16xf32>
    %cst_17 = arith.constant 0.353553385 : f32
    %44 = vector.broadcast %cst_17 : f32 to vector<16x16xf32>
    %45 = arith.mulf %43, %44 : vector<16x16xf32>
    %46 = arith.addf %45, %1 : vector<16x16xf32>
    %c32 = arith.constant 32 : index
    %c0_18 = arith.constant 0 : index
    %47 = vector.load %arg11[%c32, %c0_18] : memref<64x16xf32, #tpu.memory_space<vmem>>, vector<16x16xf32>
    tpu.vector_store %arg11[%c32, %c0_18], %46 {strides = array<i32>} : memref<64x16xf32, #tpu.memory_space<vmem>>, vector<16x16xf32>,
    %48 = vector.extract_strided_slice %20 {offsets = [0, 24], sizes = [16, 8], strides = [1, 1]} : vector<16x96xf32> to vector<16x8xf32>
    %49 = arith.truncf %48 : vector<16x8xf32> to vector<16x8xbf16>
    %50 = vector.extract_strided_slice %20 {offsets = [0, 56], sizes = [16, 8], strides = [1, 1]} : vector<16x96xf32> to vector<16x8xf32>
    %51 = arith.truncf %50 : vector<16x8xf32> to vector<16x8xbf16>
    %cst_19 = arith.constant dense<0.000000e+00> : vector<16x16xf32>
    %52 = tpu.matmul %49, %51, %cst_19 {dimension_numbers = #tpu.dot_dimension_numbers<[1], [1], [0], [0], [0, 0, 1, 0], [], []>} : vector<16x8xbf16>, vector<16x8xbf16>, vector<16x16xf32> -> vector<16x16xf32>
    %cst_20 = arith.constant 0.353553385 : f32
    %53 = vector.broadcast %cst_20 : f32 to vector<16x16xf32>
    %54 = arith.mulf %52, %53 : vector<16x16xf32>
    %55 = arith.addf %54, %1 : vector<16x16xf32>
    %c48 = arith.constant 48 : index
    %c0_21 = arith.constant 0 : index
    %56 = vector.load %arg11[%c48, %c0_21] : memref<64x16xf32, #tpu.memory_space<vmem>>, vector<16x16xf32>
    tpu.vector_store %arg11[%c48, %c0_21], %55 {strides = array<i32>} : memref<64x16xf32, #tpu.memory_space<vmem>>, vector<16x16xf32>,
    %c0_22 = arith.constant 0 : index
    %c0_23 = arith.constant 0 : index
    %57 = vector.load %arg11[%c0_22, %c0_23] : memref<64x16xf32, #tpu.memory_space<vmem>>, vector<64x16xf32>
    %cst_24 = arith.constant dense<0xFF800000> : vector<64xf32>
    %58 = vector.multi_reduction <maximumf>, %57, %cst_24 [1] : vector<64x16xf32> to vector<64xf32>
    %59 = vector.shape_cast %58 : vector<64xf32> to vector<64x1xf32>
    %60 = vector.broadcast %59 : vector<64x1xf32> to vector<64x16xf32>
    %61 = arith.subf %57, %60 : vector<64x16xf32>
    %62 = math.exp %61 : vector<64x16xf32>
    %cst_25 = arith.constant dense<0.000000e+00> : vector<64xf32>
    %63 = vector.multi_reduction <add>, %62, %cst_25 [1] : vector<64x16xf32> to vector<64xf32>
    %64 = vector.shape_cast %63 : vector<64xf32> to vector<64x1xf32>
    %65 = tpu.reciprocal %64 {approx = true} : vector<64x1xf32> -> vector<64x1xf32>
    %66 = vector.broadcast %65 : vector<64x1xf32> to vector<64x16xf32>
    %67 = arith.mulf %62, %66 : vector<64x16xf32>
    %c0_26 = arith.constant 0 : index
    %c0_27 = arith.constant 0 : index
    %68 = vector.load %arg11[%c0_26, %c0_27] : memref<64x16xf32, #tpu.memory_space<vmem>>, vector<64x16xf32>
    tpu.vector_store %arg11[%c0_26, %c0_27], %67 {strides = array<i32>} : memref<64x16xf32, #tpu.memory_space<vmem>>, vector<64x16xf32>,
    %cst_28 = arith.constant 0.000000e+00 : f32
    %69 = vector.broadcast %cst_28 : f32 to vector<16x32xf32>
    %c0_29 = arith.constant 0 : index
    %c0_30 = arith.constant 0 : index
    %70 = vector.load %arg11[%c0_29, %c0_30] : memref<64x16xf32, #tpu.memory_space<vmem>>, vector<16x16xf32>
    %71 = arith.truncf %70 : vector<16x16xf32> to vector<16x16xbf16>
    %72 = vector.extract_strided_slice %20 {offsets = [0, 64], sizes = [16, 8], strides = [1, 1]} : vector<16x96xf32> to vector<16x8xf32>
    %73 = arith.truncf %72 : vector<16x8xf32> to vector<16x8xbf16>
    %cst_31 = arith.constant dense<0.000000e+00> : vector<16x8xf32>
    %74 = tpu.matmul %71, %73, %cst_31 {dimension_numbers = #tpu.dot_dimension_numbers<[1], [0], [0], [1], [0, 0, 1, 1], [], []>} : vector<16x16xbf16>, vector<16x8xbf16>, vector<16x8xf32> -> vector<16x8xf32>
    %75 = arith.truncf %74 : vector<16x8xf32> to vector<16x8xbf16>
    %c0_32 = arith.constant 0 : index
    %c0_33 = arith.constant 0 : index
    %c0_34 = arith.constant 0 : index
    %76 = vector.load %arg4[%c0_32, %c0_33, %c0_34] : memref<8x8x32xbf16, #tpu.memory_space<vmem>>, vector<1x8x32xbf16>
    %77 = vector.shape_cast %76 : vector<1x8x32xbf16> to vector<8x32xbf16>
    %cst_35 = arith.constant dense<0.000000e+00> : vector<16x32xf32>
    %78 = tpu.matmul %75, %77, %cst_35 {dimension_numbers = #tpu.dot_dimension_numbers<[1], [0], [0], [1], [0, 0, 1, 1], [], []>} : vector<16x8xbf16>, vector<8x32xbf16>, vector<16x32xf32> -> vector<16x32xf32>
    %79 = arith.addf %69, %78 : vector<16x32xf32>
    %c16_36 = arith.constant 16 : index
    %c0_37 = arith.constant 0 : index
    %80 = vector.load %arg11[%c16_36, %c0_37] : memref<64x16xf32, #tpu.memory_space<vmem>>, vector<16x16xf32>
    %81 = arith.truncf %80 : vector<16x16xf32> to vector<16x16xbf16>
    %82 = vector.extract_strided_slice %20 {offsets = [0, 72], sizes = [16, 8], strides = [1, 1]} : vector<16x96xf32> to vector<16x8xf32>
    %83 = arith.truncf %82 : vector<16x8xf32> to vector<16x8xbf16>
    %cst_38 = arith.constant dense<0.000000e+00> : vector<16x8xf32>
    %84 = tpu.matmul %81, %83, %cst_38 {dimension_numbers = #tpu.dot_dimension_numbers<[1], [0], [0], [1], [0, 0, 1, 1], [], []>} : vector<16x16xbf16>, vector<16x8xbf16>, vector<16x8xf32> -> vector<16x8xf32>
    %85 = arith.truncf %84 : vector<16x8xf32> to vector<16x8xbf16>
    %c1 = arith.constant 1 : index
    %c0_39 = arith.constant 0 : index
    %c0_40 = arith.constant 0 : index
    %86 = vector.load %arg4[%c1, %c0_39, %c0_40] : memref<8x8x32xbf16, #tpu.memory_space<vmem>>, vector<1x8x32xbf16>
    %87 = vector.shape_cast %86 : vector<1x8x32xbf16> to vector<8x32xbf16>
    %cst_41 = arith.constant dense<0.000000e+00> : vector<16x32xf32>
    %88 = tpu.matmul %85, %87, %cst_41 {dimension_numbers = #tpu.dot_dimension_numbers<[1], [0], [0], [1], [0, 0, 1, 1], [], []>} : vector<16x8xbf16>, vector<8x32xbf16>, vector<16x32xf32> -> vector<16x32xf32>
    %89 = arith.addf %79, %88 : vector<16x32xf32>
    %c32_42 = arith.constant 32 : index
    %c0_43 = arith.constant 0 : index
    %90 = vector.load %arg11[%c32_42, %c0_43] : memref<64x16xf32, #tpu.memory_space<vmem>>, vector<16x16xf32>
    %91 = arith.truncf %90 : vector<16x16xf32> to vector<16x16xbf16>
    %92 = vector.extract_strided_slice %20 {offsets = [0, 80], sizes = [16, 8], strides = [1, 1]} : vector<16x96xf32> to vector<16x8xf32>
    %93 = arith.truncf %92 : vector<16x8xf32> to vector<16x8xbf16>
    %cst_44 = arith.constant dense<0.000000e+00> : vector<16x8xf32>
    %94 = tpu.matmul %91, %93, %cst_44 {dimension_numbers = #tpu.dot_dimension_numbers<[1], [0], [0], [1], [0, 0, 1, 1], [], []>} : vector<16x16xbf16>, vector<16x8xbf16>, vector<16x8xf32> -> vector<16x8xf32>
    %95 = arith.truncf %94 : vector<16x8xf32> to vector<16x8xbf16>
    %c2 = arith.constant 2 : index
    %c0_45 = arith.constant 0 : index
    %c0_46 = arith.constant 0 : index
    %96 = vector.load %arg4[%c2, %c0_45, %c0_46] : memref<8x8x32xbf16, #tpu.memory_space<vmem>>, vector<1x8x32xbf16>
    %97 = vector.shape_cast %96 : vector<1x8x32xbf16> to vector<8x32xbf16>
    %cst_47 = arith.constant dense<0.000000e+00> : vector<16x32xf32>
    %98 = tpu.matmul %95, %97, %cst_47 {dimension_numbers = #tpu.dot_dimension_numbers<[1], [0], [0], [1], [0, 0, 1, 1], [], []>} : vector<16x8xbf16>, vector<8x32xbf16>, vector<16x32xf32> -> vector<16x32xf32>
    %99 = arith.addf %89, %98 : vector<16x32xf32>
    %c48_48 = arith.constant 48 : index
    %c0_49 = arith.constant 0 : index
    %100 = vector.load %arg11[%c48_48, %c0_49] : memref<64x16xf32, #tpu.memory_space<vmem>>, vector<16x16xf32>
    %101 = arith.truncf %100 : vector<16x16xf32> to vector<16x16xbf16>
    %102 = vector.extract_strided_slice %20 {offsets = [0, 88], sizes = [16, 8], strides = [1, 1]} : vector<16x96xf32> to vector<16x8xf32>
    %103 = arith.truncf %102 : vector<16x8xf32> to vector<16x8xbf16>
    %cst_50 = arith.constant dense<0.000000e+00> : vector<16x8xf32>
    %104 = tpu.matmul %101, %103, %cst_50 {dimension_numbers = #tpu.dot_dimension_numbers<[1], [0], [0], [1], [0, 0, 1, 1], [], []>} : vector<16x16xbf16>, vector<16x8xbf16>, vector<16x8xf32> -> vector<16x8xf32>
    %105 = arith.truncf %104 : vector<16x8xf32> to vector<16x8xbf16>
    %c3 = arith.constant 3 : index
    %c0_51 = arith.constant 0 : index
    %c0_52 = arith.constant 0 : index
    %106 = vector.load %arg4[%c3, %c0_51, %c0_52] : memref<8x8x32xbf16, #tpu.memory_space<vmem>>, vector<1x8x32xbf16>
    %107 = vector.shape_cast %106 : vector<1x8x32xbf16> to vector<8x32xbf16>
    %cst_53 = arith.constant dense<0.000000e+00> : vector<16x32xf32>
    %108 = tpu.matmul %105, %107, %cst_53 {dimension_numbers = #tpu.dot_dimension_numbers<[1], [0], [0], [1], [0, 0, 1, 1], [], []>} : vector<16x8xbf16>, vector<8x32xbf16>, vector<16x32xf32> -> vector<16x32xf32>
    %109 = arith.addf %99, %108 : vector<16x32xf32>
    %110 = vector.broadcast %5 : vector<1x32xf32> to vector<16x32xf32>
    %111 = arith.addf %109, %110 : vector<16x32xf32>
    %112 = arith.addf %0, %111 : vector<16x32xf32>
    %cst_54 = arith.constant dense<0.000000e+00> : vector<16xf32>
    %113 = vector.multi_reduction <add>, %112, %cst_54 [1] : vector<16x32xf32> to vector<16xf32>
    %114 = vector.shape_cast %113 : vector<16xf32> to vector<16x1xf32>
    %cst_55 = arith.constant 3.200000e+01 : f32
    %115 = vector.broadcast %cst_55 : f32 to vector<16x1xf32>
    %116 = arith.divf %114, %115 : vector<16x1xf32>
    %117 = vector.broadcast %116 : vector<16x1xf32> to vector<16x32xf32>
    %118 = arith.subf %112, %117 : vector<16x32xf32>
    %119 = arith.mulf %118, %118 : vector<16x32xf32>
    %cst_56 = arith.constant dense<0.000000e+00> : vector<16xf32>
    %120 = vector.multi_reduction <add>, %119, %cst_56 [1] : vector<16x32xf32> to vector<16xf32>
    %121 = vector.shape_cast %120 : vector<16xf32> to vector<16x1xf32>
    %cst_57 = arith.constant 3.200000e+01 : f32
    %122 = vector.broadcast %cst_57 : f32 to vector<16x1xf32>
    %123 = arith.divf %121, %122 : vector<16x1xf32>
    %124 = vector.broadcast %116 : vector<16x1xf32> to vector<16x32xf32>
    %125 = arith.subf %112, %124 : vector<16x32xf32>
    %cst_58 = arith.constant 9.99999974E-6 : f32
    %126 = vector.broadcast %cst_58 : f32 to vector<16x1xf32>
    %127 = arith.addf %123, %126 : vector<16x1xf32>
    %128 = math.rsqrt %127 : vector<16x1xf32>
    %129 = vector.broadcast %128 : vector<16x1xf32> to vector<16x32xf32>
    %130 = arith.mulf %125, %129 : vector<16x32xf32>
    %131 = vector.broadcast %8 : vector<1x32xf32> to vector<16x32xf32>
    %132 = arith.mulf %130, %131 : vector<16x32xf32>
    %133 = vector.broadcast %9 : vector<1x32xf32> to vector<16x32xf32>
    %134 = arith.addf %132, %133 : vector<16x32xf32>
    %135 = vector.broadcast %14 : vector<1x32xf32> to vector<16x32xf32>
    %136 = arith.addf %134, %135 : vector<16x32xf32>
    %cst_59 = arith.constant dense<0.000000e+00> : vector<16xf32>
    %137 = vector.multi_reduction <add>, %136, %cst_59 [1] : vector<16x32xf32> to vector<16xf32>
    %138 = vector.shape_cast %137 : vector<16xf32> to vector<16x1xf32>
    %cst_60 = arith.constant 3.200000e+01 : f32
    %139 = vector.broadcast %cst_60 : f32 to vector<16x1xf32>
    %140 = arith.divf %138, %139 : vector<16x1xf32>
    %141 = vector.broadcast %140 : vector<16x1xf32> to vector<16x32xf32>
    %142 = arith.subf %136, %141 : vector<16x32xf32>
    %143 = arith.mulf %142, %142 : vector<16x32xf32>
    %cst_61 = arith.constant dense<0.000000e+00> : vector<16xf32>
    %144 = vector.multi_reduction <add>, %143, %cst_61 [1] : vector<16x32xf32> to vector<16xf32>
    %145 = vector.shape_cast %144 : vector<16xf32> to vector<16x1xf32>
    %cst_62 = arith.constant 3.200000e+01 : f32
    %146 = vector.broadcast %cst_62 : f32 to vector<16x1xf32>
    %147 = arith.divf %145, %146 : vector<16x1xf32>
    %148 = vector.broadcast %140 : vector<16x1xf32> to vector<16x32xf32>
    %149 = arith.subf %136, %148 : vector<16x32xf32>
    %cst_63 = arith.constant 9.99999974E-6 : f32
    %150 = vector.broadcast %cst_63 : f32 to vector<16x1xf32>
    %151 = arith.addf %147, %150 : vector<16x1xf32>
    %152 = math.rsqrt %151 : vector<16x1xf32>
    %153 = vector.broadcast %152 : vector<16x1xf32> to vector<16x32xf32>
    %154 = arith.mulf %149, %153 : vector<16x32xf32>
    %155 = vector.broadcast %10 : vector<1x32xf32> to vector<16x32xf32>
    %156 = arith.mulf %154, %155 : vector<16x32xf32>
    %157 = vector.broadcast %11 : vector<1x32xf32> to vector<16x32xf32>
    %158 = arith.addf %156, %157 : vector<16x32xf32>
    %159 = arith.truncf %158 : vector<16x32xf32> to vector<16x32xbf16>
    %c0_64 = arith.constant 0 : index
    %c0_65 = arith.constant 0 : index
    %c0_66 = arith.constant 0 : index
    %160 = vector.load %arg5[%c0_64, %c0_65, %c0_66] : memref<2x32x64xbf16, #tpu.memory_space<vmem>>, vector<1x32x64xbf16>
    %161 = vector.shape_cast %160 : vector<1x32x64xbf16> to vector<32x64xbf16>
    %cst_67 = arith.constant dense<0.000000e+00> : vector<16x64xf32>
    %162 = tpu.matmul %159, %161, %cst_67 {dimension_numbers = #tpu.dot_dimension_numbers<[1], [0], [0], [1], [0, 0, 1, 1], [], []>} : vector<16x32xbf16>, vector<32x64xbf16>, vector<16x64xf32> -> vector<16x64xf32>
    %163 = vector.broadcast %6 : vector<1x64xf32> to vector<16x64xf32>
    %164 = arith.addf %162, %163 : vector<16x64xf32>
    %cst_68 = arith.constant 0.000000e+00 : f32
    %165 = vector.broadcast %cst_68 : f32 to vector<16x64xf32>
    %166 = arith.maximumf %164, %165 : vector<16x64xf32>
    %167 = arith.truncf %166 : vector<16x64xf32> to vector<16x64xbf16>
    %c0_69 = arith.constant 0 : index
    %c0_70 = arith.constant 0 : index
    %c0_71 = arith.constant 0 : index
    %168 = vector.load %arg6[%c0_69, %c0_70, %c0_71] : memref<2x64x32xbf16, #tpu.memory_space<vmem>>, vector<1x64x32xbf16>
    %169 = vector.shape_cast %168 : vector<1x64x32xbf16> to vector<64x32xbf16>
    %cst_72 = arith.constant dense<0.000000e+00> : vector<16x32xf32>
    %170 = tpu.matmul %167, %169, %cst_72 {dimension_numbers = #tpu.dot_dimension_numbers<[1], [0], [0], [1], [0, 0, 1, 1], [], []>} : vector<16x64xbf16>, vector<64x32xbf16>, vector<16x32xf32> -> vector<16x32xf32>
    %171 = vector.broadcast %7 : vector<1x32xf32> to vector<16x32xf32>
    %172 = arith.addf %170, %171 : vector<16x32xf32>
    %173 = arith.addf %158, %172 : vector<16x32xf32>
    %cst_73 = arith.constant dense<0.000000e+00> : vector<16xf32>
    %174 = vector.multi_reduction <add>, %173, %cst_73 [1] : vector<16x32xf32> to vector<16xf32>
    %175 = vector.shape_cast %174 : vector<16xf32> to vector<16x1xf32>
    %cst_74 = arith.constant 3.200000e+01 : f32
    %176 = vector.broadcast %cst_74 : f32 to vector<16x1xf32>
    %177 = arith.divf %175, %176 : vector<16x1xf32>
    %178 = vector.broadcast %177 : vector<16x1xf32> to vector<16x32xf32>
    %179 = arith.subf %173, %178 : vector<16x32xf32>
    %180 = arith.mulf %179, %179 : vector<16x32xf32>
    %cst_75 = arith.constant dense<0.000000e+00> : vector<16xf32>
    %181 = vector.multi_reduction <add>, %180, %cst_75 [1] : vector<16x32xf32> to vector<16xf32>
    %182 = vector.shape_cast %181 : vector<16xf32> to vector<16x1xf32>
    %cst_76 = arith.constant 3.200000e+01 : f32
    %183 = vector.broadcast %cst_76 : f32 to vector<16x1xf32>
    %184 = arith.divf %182, %183 : vector<16x1xf32>
    %185 = vector.broadcast %177 : vector<16x1xf32> to vector<16x32xf32>
    %186 = arith.subf %173, %185 : vector<16x32xf32>
    %cst_77 = arith.constant 9.99999974E-6 : f32
    %187 = vector.broadcast %cst_77 : f32 to vector<16x1xf32>
    %188 = arith.addf %184, %187 : vector<16x1xf32>
    %189 = math.rsqrt %188 : vector<16x1xf32>
    %190 = vector.broadcast %189 : vector<16x1xf32> to vector<16x32xf32>
    %191 = arith.mulf %186, %190 : vector<16x32xf32>
    %192 = vector.broadcast %12 : vector<1x32xf32> to vector<16x32xf32>
    %193 = arith.mulf %191, %192 : vector<16x32xf32>
    %194 = vector.broadcast %13 : vector<1x32xf32> to vector<16x32xf32>
    %195 = arith.addf %193, %194 : vector<16x32xf32>
    %c1_78 = arith.constant 1 : index
    %c0_79 = arith.constant 0 : index
    %c0_80 = arith.constant 0 : index
    %196 = vector.load %arg7[%c1_78, %c0_79, %c0_80] : memref<2x11x128xf32, #tpu.memory_space<vmem>>, vector<1x11x128xf32>
    %197 = vector.shape_cast %196 : vector<1x11x128xf32> to vector<11x128xf32>
    %198 = vector.extract_strided_slice %197 {offsets = [0, 0], sizes = [1, 96], strides = [1, 1]} : vector<11x128xf32> to vector<1x96xf32>
    %199 = vector.extract_strided_slice %197 {offsets = [1, 0], sizes = [1, 32], strides = [1, 1]} : vector<11x128xf32> to vector<1x32xf32>
    %200 = vector.extract_strided_slice %197 {offsets = [2, 0], sizes = [1, 64], strides = [1, 1]} : vector<11x128xf32> to vector<1x64xf32>
    %201 = vector.extract_strided_slice %197 {offsets = [3, 0], sizes = [1, 32], strides = [1, 1]} : vector<11x128xf32> to vector<1x32xf32>
    %202 = vector.extract_strided_slice %197 {offsets = [4, 0], sizes = [1, 32], strides = [1, 1]} : vector<11x128xf32> to vector<1x32xf32>
    %203 = vector.extract_strided_slice %197 {offsets = [5, 0], sizes = [1, 32], strides = [1, 1]} : vector<11x128xf32> to vector<1x32xf32>
    %204 = vector.extract_strided_slice %197 {offsets = [6, 0], sizes = [1, 32], strides = [1, 1]} : vector<11x128xf32> to vector<1x32xf32>
    %205 = vector.extract_strided_slice %197 {offsets = [7, 0], sizes = [1, 32], strides = [1, 1]} : vector<11x128xf32> to vector<1x32xf32>
    %206 = vector.extract_strided_slice %197 {offsets = [8, 0], sizes = [1, 32], strides = [1, 1]} : vector<11x128xf32> to vector<1x32xf32>
    %207 = vector.extract_strided_slice %197 {offsets = [9, 0], sizes = [1, 32], strides = [1, 1]} : vector<11x128xf32> to vector<1x32xf32>
    %208 = vector.extract_strided_slice %197 {offsets = [10, 0], sizes = [1, 32], strides = [1, 1]} : vector<11x128xf32> to vector<1x32xf32>
    %209 = arith.truncf %195 : vector<16x32xf32> to vector<16x32xbf16>
    %c1_81 = arith.constant 1 : index
    %c0_82 = arith.constant 0 : index
    %c0_83 = arith.constant 0 : index
    %210 = vector.load %arg3[%c1_81, %c0_82, %c0_83] : memref<2x32x96xbf16, #tpu.memory_space<vmem>>, vector<1x32x96xbf16>
    %211 = vector.shape_cast %210 : vector<1x32x96xbf16> to vector<32x96xbf16>
    %cst_84 = arith.constant dense<0.000000e+00> : vector<16x96xf32>
    %212 = tpu.matmul %209, %211, %cst_84 {dimension_numbers = #tpu.dot_dimension_numbers<[1], [0], [0], [1], [0, 0, 1, 1], [], []>} : vector<16x32xbf16>, vector<32x96xbf16>, vector<16x96xf32> -> vector<16x96xf32>
    %213 = vector.broadcast %198 : vector<1x96xf32> to vector<16x96xf32>
    %214 = arith.addf %212, %213 : vector<16x96xf32>
    %215 = vector.extract_strided_slice %214 {offsets = [0, 0], sizes = [16, 8], strides = [1, 1]} : vector<16x96xf32> to vector<16x8xf32>
    %216 = arith.truncf %215 : vector<16x8xf32> to vector<16x8xbf16>
    %217 = vector.extract_strided_slice %214 {offsets = [0, 32], sizes = [16, 8], strides = [1, 1]} : vector<16x96xf32> to vector<16x8xf32>
    %218 = arith.truncf %217 : vector<16x8xf32> to vector<16x8xbf16>
    %cst_85 = arith.constant dense<0.000000e+00> : vector<16x16xf32>
    %219 = tpu.matmul %216, %218, %cst_85 {dimension_numbers = #tpu.dot_dimension_numbers<[1], [1], [0], [0], [0, 0, 1, 0], [], []>} : vector<16x8xbf16>, vector<16x8xbf16>, vector<16x16xf32> -> vector<16x16xf32>
    %cst_86 = arith.constant 0.353553385 : f32
    %220 = vector.broadcast %cst_86 : f32 to vector<16x16xf32>
    %221 = arith.mulf %219, %220 : vector<16x16xf32>
    %222 = arith.addf %221, %1 : vector<16x16xf32>
    %c0_87 = arith.constant 0 : index
    %c0_88 = arith.constant 0 : index
    %223 = vector.load %arg11[%c0_87, %c0_88] : memref<64x16xf32, #tpu.memory_space<vmem>>, vector<16x16xf32>
    tpu.vector_store %arg11[%c0_87, %c0_88], %222 {strides = array<i32>} : memref<64x16xf32, #tpu.memory_space<vmem>>, vector<16x16xf32>,
    %224 = vector.extract_strided_slice %214 {offsets = [0, 8], sizes = [16, 8], strides = [1, 1]} : vector<16x96xf32> to vector<16x8xf32>
    %225 = arith.truncf %224 : vector<16x8xf32> to vector<16x8xbf16>
    %226 = vector.extract_strided_slice %214 {offsets = [0, 40], sizes = [16, 8], strides = [1, 1]} : vector<16x96xf32> to vector<16x8xf32>
    %227 = arith.truncf %226 : vector<16x8xf32> to vector<16x8xbf16>
    %cst_89 = arith.constant dense<0.000000e+00> : vector<16x16xf32>
    %228 = tpu.matmul %225, %227, %cst_89 {dimension_numbers = #tpu.dot_dimension_numbers<[1], [1], [0], [0], [0, 0, 1, 0], [], []>} : vector<16x8xbf16>, vector<16x8xbf16>, vector<16x16xf32> -> vector<16x16xf32>
    %cst_90 = arith.constant 0.353553385 : f32
    %229 = vector.broadcast %cst_90 : f32 to vector<16x16xf32>
    %230 = arith.mulf %228, %229 : vector<16x16xf32>
    %231 = arith.addf %230, %1 : vector<16x16xf32>
    %c16_91 = arith.constant 16 : index
    %c0_92 = arith.constant 0 : index
    %232 = vector.load %arg11[%c16_91, %c0_92] : memref<64x16xf32, #tpu.memory_space<vmem>>, vector<16x16xf32>
    tpu.vector_store %arg11[%c16_91, %c0_92], %231 {strides = array<i32>} : memref<64x16xf32, #tpu.memory_space<vmem>>, vector<16x16xf32>,
    %233 = vector.extract_strided_slice %214 {offsets = [0, 16], sizes = [16, 8], strides = [1, 1]} : vector<16x96xf32> to vector<16x8xf32>
    %234 = arith.truncf %233 : vector<16x8xf32> to vector<16x8xbf16>
    %235 = vector.extract_strided_slice %214 {offsets = [0, 48], sizes = [16, 8], strides = [1, 1]} : vector<16x96xf32> to vector<16x8xf32>
    %236 = arith.truncf %235 : vector<16x8xf32> to vector<16x8xbf16>
    %cst_93 = arith.constant dense<0.000000e+00> : vector<16x16xf32>
    %237 = tpu.matmul %234, %236, %cst_93 {dimension_numbers = #tpu.dot_dimension_numbers<[1], [1], [0], [0], [0, 0, 1, 0], [], []>} : vector<16x8xbf16>, vector<16x8xbf16>, vector<16x16xf32> -> vector<16x16xf32>
    %cst_94 = arith.constant 0.353553385 : f32
    %238 = vector.broadcast %cst_94 : f32 to vector<16x16xf32>
    %239 = arith.mulf %237, %238 : vector<16x16xf32>
    %240 = arith.addf %239, %1 : vector<16x16xf32>
    %c32_95 = arith.constant 32 : index
    %c0_96 = arith.constant 0 : index
    %241 = vector.load %arg11[%c32_95, %c0_96] : memref<64x16xf32, #tpu.memory_space<vmem>>, vector<16x16xf32>
    tpu.vector_store %arg11[%c32_95, %c0_96], %240 {strides = array<i32>} : memref<64x16xf32, #tpu.memory_space<vmem>>, vector<16x16xf32>,
    %242 = vector.extract_strided_slice %214 {offsets = [0, 24], sizes = [16, 8], strides = [1, 1]} : vector<16x96xf32> to vector<16x8xf32>
    %243 = arith.truncf %242 : vector<16x8xf32> to vector<16x8xbf16>
    %244 = vector.extract_strided_slice %214 {offsets = [0, 56], sizes = [16, 8], strides = [1, 1]} : vector<16x96xf32> to vector<16x8xf32>
    %245 = arith.truncf %244 : vector<16x8xf32> to vector<16x8xbf16>
    %cst_97 = arith.constant dense<0.000000e+00> : vector<16x16xf32>
    %246 = tpu.matmul %243, %245, %cst_97 {dimension_numbers = #tpu.dot_dimension_numbers<[1], [1], [0], [0], [0, 0, 1, 0], [], []>} : vector<16x8xbf16>, vector<16x8xbf16>, vector<16x16xf32> -> vector<16x16xf32>
    %cst_98 = arith.constant 0.353553385 : f32
    %247 = vector.broadcast %cst_98 : f32 to vector<16x16xf32>
    %248 = arith.mulf %246, %247 : vector<16x16xf32>
    %249 = arith.addf %248, %1 : vector<16x16xf32>
    %c48_99 = arith.constant 48 : index
    %c0_100 = arith.constant 0 : index
    %250 = vector.load %arg11[%c48_99, %c0_100] : memref<64x16xf32, #tpu.memory_space<vmem>>, vector<16x16xf32>
    tpu.vector_store %arg11[%c48_99, %c0_100], %249 {strides = array<i32>} : memref<64x16xf32, #tpu.memory_space<vmem>>, vector<16x16xf32>,
    %c0_101 = arith.constant 0 : index
    %c0_102 = arith.constant 0 : index
    %251 = vector.load %arg11[%c0_101, %c0_102] : memref<64x16xf32, #tpu.memory_space<vmem>>, vector<64x16xf32>
    %cst_103 = arith.constant dense<0xFF800000> : vector<64xf32>
    %252 = vector.multi_reduction <maximumf>, %251, %cst_103 [1] : vector<64x16xf32> to vector<64xf32>
    %253 = vector.shape_cast %252 : vector<64xf32> to vector<64x1xf32>
    %254 = vector.broadcast %253 : vector<64x1xf32> to vector<64x16xf32>
    %255 = arith.subf %251, %254 : vector<64x16xf32>
    %256 = math.exp %255 : vector<64x16xf32>
    %cst_104 = arith.constant dense<0.000000e+00> : vector<64xf32>
    %257 = vector.multi_reduction <add>, %256, %cst_104 [1] : vector<64x16xf32> to vector<64xf32>
    %258 = vector.shape_cast %257 : vector<64xf32> to vector<64x1xf32>
    %259 = tpu.reciprocal %258 {approx = true} : vector<64x1xf32> -> vector<64x1xf32>
    %260 = vector.broadcast %259 : vector<64x1xf32> to vector<64x16xf32>
    %261 = arith.mulf %256, %260 : vector<64x16xf32>
    %c0_105 = arith.constant 0 : index
    %c0_106 = arith.constant 0 : index
    %262 = vector.load %arg11[%c0_105, %c0_106] : memref<64x16xf32, #tpu.memory_space<vmem>>, vector<64x16xf32>
    tpu.vector_store %arg11[%c0_105, %c0_106], %261 {strides = array<i32>} : memref<64x16xf32, #tpu.memory_space<vmem>>, vector<64x16xf32>,
    %cst_107 = arith.constant 0.000000e+00 : f32
    %263 = vector.broadcast %cst_107 : f32 to vector<16x32xf32>
    %c0_108 = arith.constant 0 : index
    %c0_109 = arith.constant 0 : index
    %264 = vector.load %arg11[%c0_108, %c0_109] : memref<64x16xf32, #tpu.memory_space<vmem>>, vector<16x16xf32>
    %265 = arith.truncf %264 : vector<16x16xf32> to vector<16x16xbf16>
    %266 = vector.extract_strided_slice %214 {offsets = [0, 64], sizes = [16, 8], strides = [1, 1]} : vector<16x96xf32> to vector<16x8xf32>
    %267 = arith.truncf %266 : vector<16x8xf32> to vector<16x8xbf16>
    %cst_110 = arith.constant dense<0.000000e+00> : vector<16x8xf32>
    %268 = tpu.matmul %265, %267, %cst_110 {dimension_numbers = #tpu.dot_dimension_numbers<[1], [0], [0], [1], [0, 0, 1, 1], [], []>} : vector<16x16xbf16>, vector<16x8xbf16>, vector<16x8xf32> -> vector<16x8xf32>
    %269 = arith.truncf %268 : vector<16x8xf32> to vector<16x8xbf16>
    %c4 = arith.constant 4 : index
    %c0_111 = arith.constant 0 : index
    %c0_112 = arith.constant 0 : index
    %270 = vector.load %arg4[%c4, %c0_111, %c0_112] : memref<8x8x32xbf16, #tpu.memory_space<vmem>>, vector<1x8x32xbf16>
    %271 = vector.shape_cast %270 : vector<1x8x32xbf16> to vector<8x32xbf16>
    %cst_113 = arith.constant dense<0.000000e+00> : vector<16x32xf32>
    %272 = tpu.matmul %269, %271, %cst_113 {dimension_numbers = #tpu.dot_dimension_numbers<[1], [0], [0], [1], [0, 0, 1, 1], [], []>} : vector<16x8xbf16>, vector<8x32xbf16>, vector<16x32xf32> -> vector<16x32xf32>
    %273 = arith.addf %263, %272 : vector<16x32xf32>
    %c16_114 = arith.constant 16 : index
    %c0_115 = arith.constant 0 : index
    %274 = vector.load %arg11[%c16_114, %c0_115] : memref<64x16xf32, #tpu.memory_space<vmem>>, vector<16x16xf32>
    %275 = arith.truncf %274 : vector<16x16xf32> to vector<16x16xbf16>
    %276 = vector.extract_strided_slice %214 {offsets = [0, 72], sizes = [16, 8], strides = [1, 1]} : vector<16x96xf32> to vector<16x8xf32>
    %277 = arith.truncf %276 : vector<16x8xf32> to vector<16x8xbf16>
    %cst_116 = arith.constant dense<0.000000e+00> : vector<16x8xf32>
    %278 = tpu.matmul %275, %277, %cst_116 {dimension_numbers = #tpu.dot_dimension_numbers<[1], [0], [0], [1], [0, 0, 1, 1], [], []>} : vector<16x16xbf16>, vector<16x8xbf16>, vector<16x8xf32> -> vector<16x8xf32>
    %279 = arith.truncf %278 : vector<16x8xf32> to vector<16x8xbf16>
    %c5 = arith.constant 5 : index
    %c0_117 = arith.constant 0 : index
    %c0_118 = arith.constant 0 : index
    %280 = vector.load %arg4[%c5, %c0_117, %c0_118] : memref<8x8x32xbf16, #tpu.memory_space<vmem>>, vector<1x8x32xbf16>
    %281 = vector.shape_cast %280 : vector<1x8x32xbf16> to vector<8x32xbf16>
    %cst_119 = arith.constant dense<0.000000e+00> : vector<16x32xf32>
    %282 = tpu.matmul %279, %281, %cst_119 {dimension_numbers = #tpu.dot_dimension_numbers<[1], [0], [0], [1], [0, 0, 1, 1], [], []>} : vector<16x8xbf16>, vector<8x32xbf16>, vector<16x32xf32> -> vector<16x32xf32>
    %283 = arith.addf %273, %282 : vector<16x32xf32>
    %c32_120 = arith.constant 32 : index
    %c0_121 = arith.constant 0 : index
    %284 = vector.load %arg11[%c32_120, %c0_121] : memref<64x16xf32, #tpu.memory_space<vmem>>, vector<16x16xf32>
    %285 = arith.truncf %284 : vector<16x16xf32> to vector<16x16xbf16>
    %286 = vector.extract_strided_slice %214 {offsets = [0, 80], sizes = [16, 8], strides = [1, 1]} : vector<16x96xf32> to vector<16x8xf32>
    %287 = arith.truncf %286 : vector<16x8xf32> to vector<16x8xbf16>
    %cst_122 = arith.constant dense<0.000000e+00> : vector<16x8xf32>
    %288 = tpu.matmul %285, %287, %cst_122 {dimension_numbers = #tpu.dot_dimension_numbers<[1], [0], [0], [1], [0, 0, 1, 1], [], []>} : vector<16x16xbf16>, vector<16x8xbf16>, vector<16x8xf32> -> vector<16x8xf32>
    %289 = arith.truncf %288 : vector<16x8xf32> to vector<16x8xbf16>
    %c6 = arith.constant 6 : index
    %c0_123 = arith.constant 0 : index
    %c0_124 = arith.constant 0 : index
    %290 = vector.load %arg4[%c6, %c0_123, %c0_124] : memref<8x8x32xbf16, #tpu.memory_space<vmem>>, vector<1x8x32xbf16>
    %291 = vector.shape_cast %290 : vector<1x8x32xbf16> to vector<8x32xbf16>
    %cst_125 = arith.constant dense<0.000000e+00> : vector<16x32xf32>
    %292 = tpu.matmul %289, %291, %cst_125 {dimension_numbers = #tpu.dot_dimension_numbers<[1], [0], [0], [1], [0, 0, 1, 1], [], []>} : vector<16x8xbf16>, vector<8x32xbf16>, vector<16x32xf32> -> vector<16x32xf32>
    %293 = arith.addf %283, %292 : vector<16x32xf32>
    %c48_126 = arith.constant 48 : index
    %c0_127 = arith.constant 0 : index
    %294 = vector.load %arg11[%c48_126, %c0_127] : memref<64x16xf32, #tpu.memory_space<vmem>>, vector<16x16xf32>
    %295 = arith.truncf %294 : vector<16x16xf32> to vector<16x16xbf16>
    %296 = vector.extract_strided_slice %214 {offsets = [0, 88], sizes = [16, 8], strides = [1, 1]} : vector<16x96xf32> to vector<16x8xf32>
    %297 = arith.truncf %296 : vector<16x8xf32> to vector<16x8xbf16>
    %cst_128 = arith.constant dense<0.000000e+00> : vector<16x8xf32>
    %298 = tpu.matmul %295, %297, %cst_128 {dimension_numbers = #tpu.dot_dimension_numbers<[1], [0], [0], [1], [0, 0, 1, 1], [], []>} : vector<16x16xbf16>, vector<16x8xbf16>, vector<16x8xf32> -> vector<16x8xf32>
    %299 = arith.truncf %298 : vector<16x8xf32> to vector<16x8xbf16>
    %c7 = arith.constant 7 : index
    %c0_129 = arith.constant 0 : index
    %c0_130 = arith.constant 0 : index
    %300 = vector.load %arg4[%c7, %c0_129, %c0_130] : memref<8x8x32xbf16, #tpu.memory_space<vmem>>, vector<1x8x32xbf16>
    %301 = vector.shape_cast %300 : vector<1x8x32xbf16> to vector<8x32xbf16>
    %cst_131 = arith.constant dense<0.000000e+00> : vector<16x32xf32>
    %302 = tpu.matmul %299, %301, %cst_131 {dimension_numbers = #tpu.dot_dimension_numbers<[1], [0], [0], [1], [0, 0, 1, 1], [], []>} : vector<16x8xbf16>, vector<8x32xbf16>, vector<16x32xf32> -> vector<16x32xf32>
    %303 = arith.addf %293, %302 : vector<16x32xf32>
    %304 = vector.broadcast %199 : vector<1x32xf32> to vector<16x32xf32>
    %305 = arith.addf %303, %304 : vector<16x32xf32>
    %306 = arith.addf %195, %305 : vector<16x32xf32>
    %cst_132 = arith.constant dense<0.000000e+00> : vector<16xf32>
    %307 = vector.multi_reduction <add>, %306, %cst_132 [1] : vector<16x32xf32> to vector<16xf32>
    %308 = vector.shape_cast %307 : vector<16xf32> to vector<16x1xf32>
    %cst_133 = arith.constant 3.200000e+01 : f32
    %309 = vector.broadcast %cst_133 : f32 to vector<16x1xf32>
    %310 = arith.divf %308, %309 : vector<16x1xf32>
    %311 = vector.broadcast %310 : vector<16x1xf32> to vector<16x32xf32>
    %312 = arith.subf %306, %311 : vector<16x32xf32>
    %313 = arith.mulf %312, %312 : vector<16x32xf32>
    %cst_134 = arith.constant dense<0.000000e+00> : vector<16xf32>
    %314 = vector.multi_reduction <add>, %313, %cst_134 [1] : vector<16x32xf32> to vector<16xf32>
    %315 = vector.shape_cast %314 : vector<16xf32> to vector<16x1xf32>
    %cst_135 = arith.constant 3.200000e+01 : f32
    %316 = vector.broadcast %cst_135 : f32 to vector<16x1xf32>
    %317 = arith.divf %315, %316 : vector<16x1xf32>
    %318 = vector.broadcast %310 : vector<16x1xf32> to vector<16x32xf32>
    %319 = arith.subf %306, %318 : vector<16x32xf32>
    %cst_136 = arith.constant 9.99999974E-6 : f32
    %320 = vector.broadcast %cst_136 : f32 to vector<16x1xf32>
    %321 = arith.addf %317, %320 : vector<16x1xf32>
    %322 = math.rsqrt %321 : vector<16x1xf32>
    %323 = vector.broadcast %322 : vector<16x1xf32> to vector<16x32xf32>
    %324 = arith.mulf %319, %323 : vector<16x32xf32>
    %325 = vector.broadcast %202 : vector<1x32xf32> to vector<16x32xf32>
    %326 = arith.mulf %324, %325 : vector<16x32xf32>
    %327 = vector.broadcast %203 : vector<1x32xf32> to vector<16x32xf32>
    %328 = arith.addf %326, %327 : vector<16x32xf32>
    %329 = vector.broadcast %208 : vector<1x32xf32> to vector<16x32xf32>
    %330 = arith.addf %328, %329 : vector<16x32xf32>
    %cst_137 = arith.constant dense<0.000000e+00> : vector<16xf32>
    %331 = vector.multi_reduction <add>, %330, %cst_137 [1] : vector<16x32xf32> to vector<16xf32>
    %332 = vector.shape_cast %331 : vector<16xf32> to vector<16x1xf32>
    %cst_138 = arith.constant 3.200000e+01 : f32
    %333 = vector.broadcast %cst_138 : f32 to vector<16x1xf32>
    %334 = arith.divf %332, %333 : vector<16x1xf32>
    %335 = vector.broadcast %334 : vector<16x1xf32> to vector<16x32xf32>
    %336 = arith.subf %330, %335 : vector<16x32xf32>
    %337 = arith.mulf %336, %336 : vector<16x32xf32>
    %cst_139 = arith.constant dense<0.000000e+00> : vector<16xf32>
    %338 = vector.multi_reduction <add>, %337, %cst_139 [1] : vector<16x32xf32> to vector<16xf32>
    %339 = vector.shape_cast %338 : vector<16xf32> to vector<16x1xf32>
    %cst_140 = arith.constant 3.200000e+01 : f32
    %340 = vector.broadcast %cst_140 : f32 to vector<16x1xf32>
    %341 = arith.divf %339, %340 : vector<16x1xf32>
    %342 = vector.broadcast %334 : vector<16x1xf32> to vector<16x32xf32>
    %343 = arith.subf %330, %342 : vector<16x32xf32>
    %cst_141 = arith.constant 9.99999974E-6 : f32
    %344 = vector.broadcast %cst_141 : f32 to vector<16x1xf32>
    %345 = arith.addf %341, %344 : vector<16x1xf32>
    %346 = math.rsqrt %345 : vector<16x1xf32>
    %347 = vector.broadcast %346 : vector<16x1xf32> to vector<16x32xf32>
    %348 = arith.mulf %343, %347 : vector<16x32xf32>
    %349 = vector.broadcast %204 : vector<1x32xf32> to vector<16x32xf32>
    %350 = arith.mulf %348, %349 : vector<16x32xf32>
    %351 = vector.broadcast %205 : vector<1x32xf32> to vector<16x32xf32>
    %352 = arith.addf %350, %351 : vector<16x32xf32>
    %353 = arith.truncf %352 : vector<16x32xf32> to vector<16x32xbf16>
    %c1_142 = arith.constant 1 : index
    %c0_143 = arith.constant 0 : index
    %c0_144 = arith.constant 0 : index
    %354 = vector.load %arg5[%c1_142, %c0_143, %c0_144] : memref<2x32x64xbf16, #tpu.memory_space<vmem>>, vector<1x32x64xbf16>
    %355 = vector.shape_cast %354 : vector<1x32x64xbf16> to vector<32x64xbf16>
    %cst_145 = arith.constant dense<0.000000e+00> : vector<16x64xf32>
    %356 = tpu.matmul %353, %355, %cst_145 {dimension_numbers = #tpu.dot_dimension_numbers<[1], [0], [0], [1], [0, 0, 1, 1], [], []>} : vector<16x32xbf16>, vector<32x64xbf16>, vector<16x64xf32> -> vector<16x64xf32>
    %357 = vector.broadcast %200 : vector<1x64xf32> to vector<16x64xf32>
    %358 = arith.addf %356, %357 : vector<16x64xf32>
    %cst_146 = arith.constant 0.000000e+00 : f32
    %359 = vector.broadcast %cst_146 : f32 to vector<16x64xf32>
    %360 = arith.maximumf %358, %359 : vector<16x64xf32>
    %361 = arith.truncf %360 : vector<16x64xf32> to vector<16x64xbf16>
    %c1_147 = arith.constant 1 : index
    %c0_148 = arith.constant 0 : index
    %c0_149 = arith.constant 0 : index
    %362 = vector.load %arg6[%c1_147, %c0_148, %c0_149] : memref<2x64x32xbf16, #tpu.memory_space<vmem>>, vector<1x64x32xbf16>
    %363 = vector.shape_cast %362 : vector<1x64x32xbf16> to vector<64x32xbf16>
    %cst_150 = arith.constant dense<0.000000e+00> : vector<16x32xf32>
    %364 = tpu.matmul %361, %363, %cst_150 {dimension_numbers = #tpu.dot_dimension_numbers<[1], [0], [0], [1], [0, 0, 1, 1], [], []>} : vector<16x64xbf16>, vector<64x32xbf16>, vector<16x32xf32> -> vector<16x32xf32>
    %365 = vector.broadcast %201 : vector<1x32xf32> to vector<16x32xf32>
    %366 = arith.addf %364, %365 : vector<16x32xf32>
    %367 = arith.addf %352, %366 : vector<16x32xf32>
    %cst_151 = arith.constant dense<0.000000e+00> : vector<16xf32>
    %368 = vector.multi_reduction <add>, %367, %cst_151 [1] : vector<16x32xf32> to vector<16xf32>
    %369 = vector.shape_cast %368 : vector<16xf32> to vector<16x1xf32>
    %cst_152 = arith.constant 3.200000e+01 : f32
    %370 = vector.broadcast %cst_152 : f32 to vector<16x1xf32>
    %371 = arith.divf %369, %370 : vector<16x1xf32>
    %372 = vector.broadcast %371 : vector<16x1xf32> to vector<16x32xf32>
    %373 = arith.subf %367, %372 : vector<16x32xf32>
    %374 = arith.mulf %373, %373 : vector<16x32xf32>
    %cst_153 = arith.constant dense<0.000000e+00> : vector<16xf32>
    %375 = vector.multi_reduction <add>, %374, %cst_153 [1] : vector<16x32xf32> to vector<16xf32>
    %376 = vector.shape_cast %375 : vector<16xf32> to vector<16x1xf32>
    %cst_154 = arith.constant 3.200000e+01 : f32
    %377 = vector.broadcast %cst_154 : f32 to vector<16x1xf32>
    %378 = arith.divf %376, %377 : vector<16x1xf32>
    %379 = vector.broadcast %371 : vector<16x1xf32> to vector<16x32xf32>
    %380 = arith.subf %367, %379 : vector<16x32xf32>
    %cst_155 = arith.constant 9.99999974E-6 : f32
    %381 = vector.broadcast %cst_155 : f32 to vector<16x1xf32>
    %382 = arith.addf %378, %381 : vector<16x1xf32>
    %383 = math.rsqrt %382 : vector<16x1xf32>
    %384 = vector.broadcast %383 : vector<16x1xf32> to vector<16x32xf32>
    %385 = arith.mulf %380, %384 : vector<16x32xf32>
    %386 = vector.broadcast %206 : vector<1x32xf32> to vector<16x32xf32>
    %387 = arith.mulf %385, %386 : vector<16x32xf32>
    %388 = vector.broadcast %207 : vector<1x32xf32> to vector<16x32xf32>
    %389 = arith.addf %387, %388 : vector<16x32xf32>
    %390 = arith.truncf %389 : vector<16x32xf32> to vector<16x32xbf16>
    %c0_156 = arith.constant 0 : index
    %c0_157 = arith.constant 0 : index
    %391 = vector.load %arg8[%c0_156, %c0_157] : memref<32x128xbf16, #tpu.memory_space<vmem>>, vector<32x128xbf16>
    %cst_158 = arith.constant dense<0.000000e+00> : vector<16x128xf32>
    %392 = tpu.matmul %390, %391, %cst_158 {dimension_numbers = #tpu.dot_dimension_numbers<[1], [0], [0], [1], [0, 0, 1, 1], [], []>} : vector<16x32xbf16>, vector<32x128xbf16>, vector<16x128xf32> -> vector<16x128xf32>
    %c0_159 = arith.constant 0 : index
    %c0_160 = arith.constant 0 : index
    %393 = vector.load %arg9[%c0_159, %c0_160] : memref<1x128xf32, #tpu.memory_space<vmem>>, vector<1x128xf32>
    %394 = vector.broadcast %393 : vector<1x128xf32> to vector<16x128xf32>
    %395 = arith.addf %392, %394 : vector<16x128xf32>
    %c0_161 = arith.constant 0 : index
    %c0_162 = arith.constant 0 : index
    %396 = vector.load %arg2[%c0_161, %c0_162] : memref<16x128xf32, #tpu.memory_space<vmem>>, vector<16x128xf32>
    %cst_163 = arith.constant dense<0.000000e+00> : vector<16xf32>
    %397 = vector.multi_reduction <add>, %396, %cst_163 [1] : vector<16x128xf32> to vector<16xf32>
    %398 = vector.shape_cast %397 : vector<16xf32> to vector<16x1xf32>
    %cst_164 = arith.constant dense<0xFF800000> : vector<16xf32>
    %399 = vector.multi_reduction <maximumf>, %395, %cst_164 [1] : vector<16x128xf32> to vector<16xf32>
    %400 = vector.shape_cast %399 : vector<16xf32> to vector<16x1xf32>
    %401 = vector.broadcast %400 : vector<16x1xf32> to vector<16x128xf32>
    %402 = arith.subf %395, %401 : vector<16x128xf32>
    %403 = math.exp %402 : vector<16x128xf32>
    %cst_165 = arith.constant dense<0.000000e+00> : vector<16xf32>
    %404 = vector.multi_reduction <add>, %403, %cst_165 [1] : vector<16x128xf32> to vector<16xf32>
    %405 = vector.shape_cast %404 : vector<16xf32> to vector<16x1xf32>
    %406 = math.log %405 : vector<16x1xf32>
    %407 = arith.addf %400, %406 : vector<16x1xf32>
    %408 = arith.mulf %395, %396 : vector<16x128xf32>
    %cst_166 = arith.constant dense<0.000000e+00> : vector<16xf32>
    %409 = vector.multi_reduction <add>, %408, %cst_166 [1] : vector<16x128xf32> to vector<16xf32>
    %410 = vector.shape_cast %409 : vector<16xf32> to vector<16x1xf32>
    %cst_167 = arith.constant 0.000000e+00 : f32
    %411 = vector.broadcast %cst_167 : f32 to vector<16x1xf32>
    %412 = arith.cmpf ogt, %398, %411 : vector<16x1xf32>
    %413 = arith.subf %407, %410 : vector<16x1xf32>
    %cst_168 = arith.constant 0.000000e+00 : f32
    %414 = vector.broadcast %cst_168 : f32 to vector<16x1xf32>
    %415 = arith.select %412, %413, %414 : vector<16x1xi1>, vector<16x1xf32>
    %cst_169 = arith.constant dense<0.000000e+00> : vector<1xf32>
    %416 = vector.multi_reduction <add>, %415, %cst_169 [0] : vector<16x1xf32> to vector<1xf32>
    %417 = vector.shape_cast %416 : vector<1xf32> to vector<1x1xf32>
    %cst_170 = arith.constant dense<0.000000e+00> : vector<1xf32>
    %418 = vector.multi_reduction <add>, %398, %cst_170 [0] : vector<16x1xf32> to vector<1xf32>
    %419 = vector.shape_cast %418 : vector<1xf32> to vector<1x1xf32>
    %420 = arith.divf %417, %419 : vector<1x1xf32>
    %c0_171 = arith.constant 0 : index
    %c0_172 = arith.constant 0 : index
    %421 = vector.load %arg10[%c0_171, %c0_172] : memref<1x1xf32, #tpu.memory_space<vmem>>, vector<1x1xf32>
    tpu.vector_store %arg10[%c0_171, %c0_172], %420 {strides = array<i32>} : memref<1x1xf32, #tpu.memory_space<vmem>>, vector<1x1xf32>,
    return
  }
}

</mosaic_0001>

<bundles_post_ra>
// kernel: tile.8
= control target key start
LH: loop header
LB: loop body
LE: loop exit
PB: predicated region body
PF: predicated region fallthrough
CT: control target
= control target key end

     0   :  { %s154_s0 = inlined_call_operand.vmem [shape: f32[8,8], index: 0, kind: input, shape index: {}]   ;;  %s155_s1 = inlined_call_operand.vmem [shape: f32[2,8,2,8], index: 1, kind: output, shape index: {}]  }
   0x1   :  { %v4_v0 = vld [vmem:[%s154_s0] ss:$0 sm:$0xff]  ;;  %v51_v1 = vld [vmem:[%s154_s0 + $0x1] ss:$0 sm:$0xff]  ;;  %v54_v2 = vld [vmem:[%s154_s0 + $0x2] ss:$0 sm:$0xff] }
   0x2   :  { %5 = vst [vmem:[%s155_s1] sm:$0x3] %v4_v0  ;;  %50 = vst [vmem:[%s155_s1 + $0x10] sm:$0x3] %v4_v0  ;;  %v57_v3 = vld [vmem:[%s154_s0 + $0x3] ss:$0 sm:$0xff] }
   0x3   :  { %52 = vst [vmem:[%s155_s1 + $0x2] sm:$0x3] %v51_v1  ;;  %53 = vst [vmem:[%s155_s1 + $0x12] sm:$0x3] %v51_v1  ;;  %v60_v4 = vld [vmem:[%s154_s0 + $0x4] ss:$0 sm:$0xff] }
   0x4   :  { %55 = vst [vmem:[%s155_s1 + $0x4] sm:$0x3] %v54_v2  ;;  %56 = vst [vmem:[%s155_s1 + $0x14] sm:$0x3] %v54_v2  ;;  %v63_v5 = vld [vmem:[%s154_s0 + $0x5] ss:$0 sm:$0xff] }
   0x5   :  { %58 = vst [vmem:[%s155_s1 + $0x6] sm:$0x3] %v57_v3  ;;  %59 = vst [vmem:[%s155_s1 + $0x16] sm:$0x3] %v57_v3  ;;  %v66_v6 = vld [vmem:[%s154_s0 + $0x6] ss:$0 sm:$0xff] }
   0x6   :  { %61 = vst [vmem:[%s155_s1 + $0x8] sm:$0x3] %v60_v4  ;;  %62 = vst [vmem:[%s155_s1 + $0x18] sm:$0x3] %v60_v4  ;;  %v69_v7 = vld [vmem:[%s154_s0 + $0x7] ss:$0 sm:$0xff] }
   0x7   :  { %64 = vst [vmem:[%s155_s1 + $0xa] sm:$0x3] %v63_v5  ;;  %65 = vst [vmem:[%s155_s1 + $0x1a] sm:$0x3] %v63_v5 }
   0x8   :  { %67 = vst [vmem:[%s155_s1 + $0xc] sm:$0x3] %v66_v6  ;;  %68 = vst [vmem:[%s155_s1 + $0x1c] sm:$0x3] %v66_v6 }
   0x9   :  { %70 = vst [vmem:[%s155_s1 + $0xe] sm:$0x3] %v69_v7  ;;  %71 = vst [vmem:[%s155_s1 + $0x1e] sm:$0x3] %v69_v7 }

// kernel: tile.9
= control target key start
LH: loop header
LB: loop body
LE: loop exit
PB: predicated region body
PF: predicated region fallthrough
CT: control target
= control target key end

     0   :  { %vm82_vm0 = vcmask 1047556   ;;  %vm84_vm1 = vcmask 64512   ;;  %vm103_vm2 = vcmask 130112   ;;  %s225_s0 = inlined_call_operand.vmem [shape: f32[2,8,2,8], index: 0, kind: input, shape index: {}]   ;;  %s226_s1 = inlined_call_operand.vmem [shape: f32[16,16], index: 1, kind: output, shape index: {}]  }
   0x1   :  { %v138_v0 = vld [vmem:[%s225_s0 + $0xe] sm:$0x3]  ;;  %v139_v1 = vld [vmem:[%s225_s0 + $0xc] sm:$0x3]  ;;  %v140_v2 = vld [vmem:[%s225_s0 + $0xa] sm:$0x3] }
   0x2   :  { %48 = vst [vmem:[#allocation0 + $0x38] sm:$0x3] %v138_v0  ;;  %53 = vst [vmem:[#allocation0 + $0x30] sm:$0x3] %v139_v1  ;;  %v141_v3 = vld [vmem:[%s225_s0 + $0x8] sm:$0x3] }
   0x3   :  { %58 = vst [vmem:[#allocation0 + $0x28] sm:$0x3] %v140_v2  ;;  %v142_v4 = vld [vmem:[%s225_s0 + $0x6] sm:$0x3]  ;;  %v143_v5 = vld [vmem:[%s225_s0 + $0x4] sm:$0x3] }
   0x4   :  { %63 = vst [vmem:[#allocation0 + $0x20] sm:$0x3] %v141_v3  ;;  %68 = vst [vmem:[#allocation0 + $0x18] sm:$0x3] %v142_v4  ;;  %v144_v6 = vld [vmem:[%s225_s0 + $0x2] sm:$0x3] }
   0x5   :  { %73 = vst [vmem:[#allocation0 + $0x10] sm:$0x3] %v143_v5  ;;  %v78_v7 = vld [vmem:[%s225_s0] sm:$0x3]  ;;  %77 = vst [vmem:[#allocation0 + $0x8] sm:$0x3] %v144_v6 }
   0x6   :  { %79 = vst [vmem:[#allocation0] sm:$0x3] %v78_v7  ;;  %v130_v8 = vld [vmem:[%s225_s0 + $0x1e] sm:$0x3]  ;;  %v131_v9 = vld [vmem:[%s225_s0 + $0x1c] sm:$0x3] }
   0x7   :  { %v132_v10 = vld [vmem:[%s225_s0 + $0x1a] sm:$0x3]  ;;  %8 = vst [vmem:[#allocation0 + $0x78] sm:$0x3] %v130_v8  ;;  %13 = vst [vmem:[#allocation0 + $0x70] sm:$0x3] %v131_v9 }
   0x8   :  { %18 = vst [vmem:[#allocation0 + $0x68] sm:$0x3] %v132_v10  ;;  %v133_v11 = vld [vmem:[%s225_s0 + $0x18] sm:$0x3]  ;;  %v134_v12 = vld [vmem:[%s225_s0 + $0x16] sm:$0x3] }
   0x9   :  { %v135_v13 = vld [vmem:[%s225_s0 + $0x14] sm:$0x3]  ;;  %23 = vst [vmem:[#allocation0 + $0x60] sm:$0x3] %v133_v11  ;;  %28 = vst [vmem:[#allocation0 + $0x58] sm:$0x3] %v134_v12 }
   0xa   :  { %33 = vst [vmem:[#allocation0 + $0x50] sm:$0x3] %v135_v13  ;;  %v136_v14 = vld [vmem:[%s225_s0 + $0x12] sm:$0x3]  ;;  %v137_v15 = vld [vmem:[%s225_s0 + $0x10] sm:$0x3] }
   0xb   :  { %38 = vst [vmem:[#allocation0 + $0x48] sm:$0x3] %v136_v14  ;;  %43 = vst [vmem:[#allocation0 + $0x40] sm:$0x3] %v137_v15  ;;  %s148_s0 = smov 8  }
   0xc   :  { %v98_v16 = vld [vmem:[#allocation0 + $0x1] ss:$8 sm:$0xf0]   ;;  %v81_v17 = vld [vmem:[#allocation0] ss:$8 sm:$0xf0]  }
   0xd   :  { %v96_v18 = vld [vmem:[#allocation0 + $0x1] ss:$8 sm:$0xf]   ;;  %v80_v19 = vld [vmem:[#allocation0] ss:$8 sm:$0xf]  }
   0xe   :  { %v100_v20 = vsel %vm82_vm0, %v98_v16, %v96_v18  ;;  %v83_v21 = vsel %vm82_vm0, %v81_v17, %v80_v19 }
   0xf   :  { %101 = vrot.lane.b32.xlu0 %v100_v20, %s148_s0  ;;  %85 = vst.msk [vmem:[%s226_s1] sm:$0xff] %vm84_vm1, %v83_v21  }
  0x10   :  { %v108_v22 = vld [vmem:[#allocation0 + $0x41] ss:$8 sm:$0xf0]   ;;  %v89_v23 = vld [vmem:[#allocation0 + $0x40] ss:$8 sm:$0xf0]  }
  0x12   :  { %v106_v24 = vld [vmem:[#allocation0 + $0x41] ss:$8 sm:$0xf]   ;;  %v87_v25 = vld [vmem:[#allocation0 + $0x40] ss:$8 sm:$0xf]  }
  0x13   :  { %v110_v26 = vsel %vm82_vm0, %v108_v22, %v106_v24  ;;  %v91_v27 = vsel %vm82_vm0, %v89_v23, %v87_v25 }
  0x14   :  { %145 = vst.msk [vmem:[%s226_s1 + $0x8] sm:$0xff] %vm84_vm1, %v91_v27   ;;  %111 = vrot.lane.b32.xlu0 %v110_v26, %s148_s0 }
  0x81   :  { %v102_v28 = vpop.permute.xlu0 %101  }
  0x82   :  { %104 = vst.msk [vmem:[%s226_s1] sm:$0xff] %vm103_vm2, %v102_v28  }
  0x86   :  { %v112_v29 = vpop.permute.xlu0 %111  }
  0x87   :  { %146 = vst.msk [vmem:[%s226_s1 + $0x8] sm:$0xff] %vm103_vm2, %v112_v29  }

// kernel: _lm_loss_from_padded.1
= control target key start
LH: loop header
LB: loop body
LE: loop exit
PB: predicated region body
PF: predicated region fallthrough
CT: control target
= control target key end

     0   :  { %v2862_v1 = vmov 0.0   ;;  %vm2863_vm0 = vmmov 0   ;;  %vm64_vm1 = vcmask 261120   ;;  %s3469_s0 = inlined_call_operand.vmem [shape: f32[16,32], index: 0, kind: input, shape index: {}]   ;;  %s3470_s1 = inlined_call_operand.vmem [shape: f32[16,16], index: 1, kind: input, shape index: {}]   ;;  %s3471_s2 = inlined_call_operand.vmem [shape: f32[16,128], index: 2, kind: input, shape index: {}]   ;;  %s3472_s3 = inlined_call_operand.vmem [shape: bf16[2,32,96], index: 3, kind: input, shape index: {}]   ;;  %s3473_s4 = inlined_call_operand.vmem [shape: bf16[8,8,32], index: 4, kind: input, shape index: {}]   ;;  %s3474_s5 = inlined_call_operand.vmem [shape: bf16[2,32,64], index: 5, kind: input, shape index: {}]   ;;  %s3475_s6 = inlined_call_operand.vmem [shape: bf16[2,64,32], index: 6, kind: input, shape index: {}]   ;;  %s3476_s7 = inlined_call_operand.vmem [shape: f32[2,11,128], index: 7, kind: input, shape index: {}]   ;;  %s3477_s8 = inlined_call_operand.vmem [shape: bf16[32,128], index: 8, kind: input, shape index: {}]   ;;  %s3478_s9 = inlined_call_operand.vmem [shape: f32[1,128], index: 9, kind: input, shape index: {}]   ;;  %s3479_s10 = inlined_call_operand.hbm [shape: f32[1,1], index: 10, kind: output, shape index: {}]  }
   0x1   :  { %v2720_v0 = vld [vmem:[%s3472_s3] sm:$0xff]   ;;  %2498 = vmatprep.subr.bf16.mxu0 %v2862_v1  ;;  %2506 = vmatprep.subr.bf16.mxu1 %v2862_v1  ;;  %v2721_v2 = vld [vmem:[%s3472_s3 + $0x8] sm:$0xff]  }
   0x2   :  { %2499 = vmatpush3.bf16.msra.mxu0 %v2720_v0  ;;  %2502 = vmatprep.mubr.msk.bf16.mxu0 %vm2863_vm0, %v2862_v1  ;;  %v2944_v3 = vld [vmem:[%s3469_s0] sm:$0xff]  ;;  %v2949_v4 = vld [vmem:[%s3469_s0 + $0x8] sm:$0xff] }
   0x3   :  { %2500 = vmatprep.subr.bf16.mxu0 %v2862_v1  ;;  %2508 = vmatprep.mubr.msk.bf16.mxu1 %vm2863_vm0, %v2862_v1  ;;  %v43_v5 = vpack.c.bf16 %v2949_v4, %v2944_v3 }
   0x6   :  { %2501 = vmatpush3.bf16.msra.mxu0 %v2721_v2 }
   0x7   :  { %2512 = vmatprep.subr.bf16.mxu0 %v2862_v1 }
   0x9   :  { %2503 = vmatmul.mubr.msk.bf16.vlgmr.msra.gmra.mrb[0].mxu0 %vm64_vm1, %v43_v5 }
   0xa   :  { %2514 = vmatprep.mubr.msk.bf16.mxu0 %vm2863_vm0, %v2862_v1 }
   0xb   :  { %15 = vsyncpa [#allocation4], 0  ;;  %v48_v6 = vlaneseq  ;;  %v2968_v9 = vld [vmem:[%s3476_s7] sm:$0xff]  ;;  %s2864_s22 = smov 96   ;;  %s2865_s23 = smov 88   ;;  %vm113_vm2 = vcmask 64512  }
   0xc   :  { %s2866_s24 = smov 80   ;;  %s2867_s25 = smov 120   ;;  %v3012_v29 = vld [vmem:[%s3470_s1] sm:$0xff]  ;;  %vm165_vm3 = vcmask 130048   ;;  %v3017_v36 = vld [vmem:[%s3470_s1 + $0x8] sm:$0xff]  ;;  %vm551_vm4 = vcmask 1043456  }
   0xd   :  { %v2960_v7 = vshrl.u32 %v48_v6, 7  ;;  %s2868_s26 = smov 72   ;;  %s2869_s27 = smov 112   ;;  %vm1042_vm5 = vcmask 523264   ;;  %vm2334_vm8 = vcmask 0  }
   0xe   :  { %s2870_s28 = smov 104   ;;  %s2871_s13 = smov 56  }
   0xf   :  { %v2963_v8 = vsub.s32 0, %v2960_v7  ;;  %s2872_s14 = smov 48   ;;  %s2873_s15 = smov 64  }
  0x10   :  { %s2874_s16 = smov 40  }
  0x11   :  { %v51_v10 = vrot.slane %v2968_v9, %v2963_v8 }
  0xdc   :  { %v102_v11 = vpop.f32.mrb[0].mxu0 }
  0xdd   :  { %v2504_v12 = vpop.f32.mrb[1].mxu0  ;;  %v103_v14 = vadd.f32 %v102_v11, %v51_v10 }
  0xde   :  { %v105_v13 = vpop.f32.mrb[2].mxu0 }
  0xdf   :  { %v106_v15 = vadd.f32 %v105_v13, %v51_v10  ;;  %v2505_v16 = vpop.f32.mrb[3].mxu0 }
  0xe1   :  { %v2972_v17 = vpack.c.bf16 %v106_v15, %v103_v14 }
  0xe3   :  { %111 = vrot.lane.b32.xlu1 %v2972_v17, %s2864_s22  ;;  %170 = vrot.lane.b32.xlu0 %v2972_v17, %s2865_s23 }
  0xe7   :  { %227 = vrot.lane.b32.xlu1 %v2972_v17, %s2866_s24  ;;  %168 = vrot.lane.b32.xlu0 %v2972_v17, %s2867_s25 }
  0xeb   :  { %284 = vrot.lane.b32.xlu1 %v2972_v17, %s2868_s26  ;;  %225 = vrot.lane.b32.xlu0 %v2972_v17, %s2869_s27 }
  0xef   :  { %282 = vrot.lane.b32.xlu0 %v2972_v17, %s2870_s28 }
 0x155   :  { %v112_v18 = vpop.permute.xlu1 %111  ;;  %v171_v19 = vpop.permute.xlu0 %170 }
 0x156   :  { %v176_v20 = vsel %vm113_vm2, %v171_v19, 0  ;;  %v118_v21 = vsel %vm113_vm2, %v112_v18, 0 }
 0x157   :  { %2507 = vmatpush3.bf16.xpose.msra.mxu1 %v118_v21  ;;  %2513 = vmatpush3.bf16.xpose.msra.mxu0 %v176_v20 }
 0x158   :  { %2518 = vmatprep.subr.bf16.mxu1 %v2862_v1  ;;  %2524 = vmatprep.subr.bf16.mxu0 %v2862_v1 }
 0x159   :  { %v228_v22 = vpop.permute.xlu1 %227  ;;  %v169_v23 = vpop.permute.xlu0 %168 }
 0x15a   :  { %v233_v25 = vsel %vm113_vm2, %v228_v22, 0 }
 0x15d   :  { %v285_v24 = vpop.permute.xlu1 %284  ;;  %v226_v27 = vpop.permute.xlu0 %225 }
 0x15e   :  { %v290_v26 = vsel %vm113_vm2, %v285_v24, 0  ;;  %2509 = vmatmul.mubr.msk.bf16.vlgmr.msra.gmra.mrb[0].mxu1 %vm113_vm2, %v2972_v17  ;;  %2515 = vmatmul.mubr.msk.bf16.vlgmr.msra.gmra.mrb[4].mxu0 %vm113_vm2, %v169_v23 }
 0x15f   :  { %2519 = vmatpush3.bf16.xpose.msra.mxu1 %v233_v25  ;;  %2525 = vmatpush3.bf16.xpose.msra.mxu0 %v290_v26 }
 0x160   :  { %2520 = vmatprep.mubr.msk.bf16.mxu1 %vm2863_vm0, %v2862_v1  ;;  %2526 = vmatprep.mubr.msk.bf16.mxu0 %vm2863_vm0, %v2862_v1 }
 0x161   :  { %2536 = vmatprep.subr.bf16.mxu0 %v2862_v1  ;;  %2530 = vmatprep.subr.bf16.mxu1 %v2862_v1  ;;  %v283_v28 = vpop.permute.xlu0 %282 }
 0x166   :  { %2521 = vmatmul.mubr.msk.bf16.vlgmr.msra.gmra.mrb[4].mxu1 %vm113_vm2, %v226_v27  ;;  %2527 = vmatmul.mubr.msk.bf16.vlgmr.msra.gmra.mrb[8].mxu0 %vm113_vm2, %v283_v28 }
 0x167   :  { %2538 = vmatprep.mubr.msk.bf16.mxu0 %vm2863_vm0, %v2862_v1  ;;  %2532 = vmatprep.mubr.msk.bf16.mxu1 %vm2863_vm0, %v2862_v1 }
 0x231   :  { %v154_v30 = vpop.f32.mrb[0].mxu1  ;;  %v212_v31 = vpop.f32.mrb[4].mxu0 }
 0x232   :  { %v161_v32 = vmul.f32 0.35355338, %v154_v30  ;;  %v219_v33 = vmul.f32 0.35355338, %v212_v31  ;;  %v2510_v34 = vpop.f32.mrb[1].mxu1  ;;  %v2516_v35 = vpop.f32.mrb[5].mxu0 }
 0x233   :  { %v157_v37 = vpop.f32.mrb[2].mxu1  ;;  %v215_v38 = vpop.f32.mrb[6].mxu0 }
 0x234   :  { %v163_v39 = vadd.f32 %v161_v32, %v3012_v29  ;;  %v221_v40 = vadd.f32 %v219_v33, %v3012_v29  ;;  %v162_v41 = vmul.f32 0.35355338, %v157_v37  ;;  %v220_v42 = vmul.f32 0.35355338, %v215_v38  ;;  %v2511_v43 = vpop.f32.mrb[3].mxu1  ;;  %v2517_v44 = vpop.f32.mrb[7].mxu0 }
 0x236   :  { %166 = vst.msk [vmem:[#allocation2] sm:$0xff] %vm165_vm3, %v163_v39  ;;  %223 = vst.msk [vmem:[#allocation2 + $0x10] sm:$0xff] %vm165_vm3, %v221_v40  ;;  %v164_v45 = vadd.f32 %v162_v41, %v3017_v36  ;;  %v222_v46 = vadd.f32 %v220_v42, %v3017_v36 }
 0x238   :  { %167 = vst.msk [vmem:[#allocation2 + $0x8] sm:$0xff] %vm165_vm3, %v164_v45  ;;  %224 = vst.msk [vmem:[#allocation2 + $0x18] sm:$0xff] %vm165_vm3, %v222_v46 }
 0x239   :  { %v269_v47 = vpop.f32.mrb[4].mxu1  ;;  %v326_v48 = vpop.f32.mrb[8].mxu0 }
 0x23a   :  { %v276_v49 = vmul.f32 0.35355338, %v269_v47  ;;  %v333_v50 = vmul.f32 0.35355338, %v326_v48  ;;  %v2522_v51 = vpop.f32.mrb[5].mxu1  ;;  %v2528_v52 = vpop.f32.mrb[9].mxu0 }
 0x23b   :  { %v272_v53 = vpop.f32.mrb[6].mxu1  ;;  %v329_v54 = vpop.f32.mrb[10].mxu0 }
 0x23c   :  { %v278_v55 = vadd.f32 %v276_v49, %v3012_v29  ;;  %v335_v56 = vadd.f32 %v333_v50, %v3012_v29  ;;  %v277_v57 = vmul.f32 0.35355338, %v272_v53  ;;  %v334_v58 = vmul.f32 0.35355338, %v329_v54  ;;  %v2523_v59 = vpop.f32.mrb[7].mxu1  ;;  %v2529_v60 = vpop.f32.mrb[11].mxu0 }
 0x23d   :  { %v341_v61 = vld [vmem:[#allocation2 + $0x10] sm:$0xff]  ;;  %v339_v20 = vld [vmem:[#allocation2] sm:$0xff] }
 0x23e   :  { %280 = vst.msk [vmem:[#allocation2 + $0x20] sm:$0xff] %vm165_vm3, %v278_v55  ;;  %337 = vst.msk [vmem:[#allocation2 + $0x30] sm:$0xff] %vm165_vm3, %v335_v56  ;;  %v279_v62 = vadd.f32 %v277_v57, %v3017_v36  ;;  %v336_v63 = vadd.f32 %v334_v58, %v3017_v36  ;;  %v353_v0 = vsel %vm165_vm3, %v341_v61, -inf  ;;  %v347_v21 = vsel %vm165_vm3, %v339_v20, -inf }
 0x23f   :  { %354 = vmax.xlane.f32.xlu1 %v353_v0  ;;  %v342_v2 = vld [vmem:[#allocation2 + $0x18] sm:$0xff]  ;;  %v340_v22 = vld [vmem:[#allocation2 + $0x8] sm:$0xff] }
 0x240   :  { %281 = vst.msk [vmem:[#allocation2 + $0x28] sm:$0xff] %vm165_vm3, %v279_v62  ;;  %338 = vst.msk [vmem:[#allocation2 + $0x38] sm:$0xff] %vm165_vm3, %v336_v63  ;;  %v356_v5 = vsel %vm165_vm3, %v342_v2, -inf  ;;  %v350_v23 = vsel %vm165_vm3, %v340_v22, -inf }
 0x241   :  { %357 = vmax.xlane.f32.xlu0 %v356_v5 }
 0x245   :  { %v343_v24 = vld [vmem:[#allocation2 + $0x20] sm:$0xff]  ;;  %v345_v28 = vld [vmem:[#allocation2 + $0x30] sm:$0xff] }
 0x246   :  { %v359_v25 = vsel %vm165_vm3, %v343_v24, -inf  ;;  %v365_v30 = vsel %vm165_vm3, %v345_v28, -inf }
 0x247   :  { %v344_v26 = vld [vmem:[#allocation2 + $0x28] sm:$0xff]  ;;  %v346_v31 = vld [vmem:[#allocation2 + $0x38] sm:$0xff] }
 0x248   :  { %v362_v27 = vsel %vm165_vm3, %v344_v26, -inf  ;;  %v368_v32 = vsel %vm165_vm3, %v346_v31, -inf }
 0x2cc   :  { %v355_v6 = vpop.xlane.xlu1 %354 }
 0x2cd   :  { %v373_v10 = vsub.f32 %v341_v61, %v355_v6 }
 0x2ce   :  { %v358_v11 = vpop.xlane.xlu0 %357 }
 0x2cf   :  { %v383_v12 = vmul.f32 1.442695, %v373_v10  ;;  %v374_v13 = vsub.f32 %v342_v2, %v358_v11 }
 0x2d1   :  { %2738 = vpow2.f32 %v383_v12  ;;  %v385_v14 = vmul.f32 1.442695, %v374_v13 }
 0x2d3   :  { %2740 = vpow2.f32 %v385_v14 }
 0x2db   :  { %v2739_v15 = vpop.eup %2738 }
 0x2dc   :  { %v401_v16 = vsel %vm165_vm3, %v2739_v15, 0.0 }
 0x2dd   :  { %v2741_v18 = vpop.eup %2740  ;;  %402 = vadd.xlane.f32.xlu0 %v401_v16 }
 0x2de   :  { %v404_v19 = vsel %vm165_vm3, %v2741_v18, 0.0 }
 0x2df   :  { %405 = vadd.xlane.f32.xlu1 %v404_v19 }
 0x2e3   :  { %348 = vmax.xlane.f32.xlu1 %v347_v21 }
 0x2e7   :  { %351 = vmax.xlane.f32.xlu1 %v350_v23 }
 0x2eb   :  { %360 = vmax.xlane.f32.xlu1 %v359_v25 }
 0x2ef   :  { %363 = vmax.xlane.f32.xlu1 %v362_v27 }
 0x2f3   :  { %498 = vrot.lane.b32.xlu0 %v2972_v17, %s2871_s13  ;;  %366 = vmax.xlane.f32.xlu1 %v365_v30 }
 0x2f7   :  { %369 = vmax.xlane.f32.xlu1 %v368_v32 }
 0x36a   :  { %v403_v33 = vpop.xlane.xlu0 %402 }
 0x36b   :  { %2742 = vrcp.f32 %v403_v33 }
 0x36c   :  { %v406_v34 = vpop.xlane.xlu1 %405 }
 0x36d   :  { %2744 = vrcp.f32 %v406_v34 }
 0x36e   :  { %v499_v35 = vpop.permute.xlu0 %498 }
 0x36f   :  { %2537 = vmatpush3.bf16.msra.mxu0 %v499_v35 }
 0x370   :  { %v349_v37 = vpop.xlane.xlu1 %348  ;;  %2548 = vmatprep.subr.bf16.mxu0 %v2862_v1 }
 0x371   :  { %v371_v38 = vsub.f32 %v339_v20, %v349_v37 }
 0x373   :  { %v379_v39 = vmul.f32 1.442695, %v371_v38 }
 0x374   :  { %v352_v40 = vpop.xlane.xlu1 %351 }
 0x375   :  { %v2743_v41 = vpop.eup %2742  ;;  %2746 = vpow2.f32 %v379_v39  ;;  %v372_v42 = vsub.f32 %v340_v22, %v352_v40 }
 0x376   :  { %v429_v43 = vmul.f32 %v2743_v41, %v2739_v15 }
 0x377   :  { %v2745_v44 = vpop.eup %2744  ;;  %v381_v45 = vmul.f32 1.442695, %v372_v42 }
 0x378   :  { %437 = vst.msk [vmem:[#allocation2 + $0x10] sm:$0xff] %vm165_vm3, %v429_v43  ;;  %v430_v46 = vmul.f32 %v2745_v44, %v2741_v18  ;;  %v361_v47 = vpop.xlane.xlu1 %360 }
 0x379   :  { %2748 = vpow2.f32 %v381_v45  ;;  %v375_v48 = vsub.f32 %v343_v24, %v361_v47 }
 0x37a   :  { %438 = vst.msk [vmem:[#allocation2 + $0x18] sm:$0xff] %vm165_vm3, %v430_v46 }
 0x37b   :  { %v387_v49 = vmul.f32 1.442695, %v375_v48 }
 0x37c   :  { %v364_v50 = vpop.xlane.xlu1 %363 }
 0x37d   :  { %2750 = vpow2.f32 %v387_v49  ;;  %v376_v52 = vsub.f32 %v344_v26, %v364_v50 }
 0x37f   :  { %v2747_v51 = vpop.eup %2746  ;;  %v495_v56 = vld [vmem:[#allocation2 + $0x10] sm:$0xff]  ;;  %v389_v60 = vmul.f32 1.442695, %v376_v52 }
 0x380   :  { %v367_v53 = vpop.xlane.xlu1 %366  ;;  %v395_v54 = vsel %vm165_vm3, %v2747_v51, 0.0 }
 0x381   :  { %v377_v55 = vsub.f32 %v345_v28, %v367_v53  ;;  %396 = vadd.xlane.f32.xlu0 %v395_v54  ;;  %v496_v57 = vld [vmem:[#allocation2 + $0x18] sm:$0xff] }
 0x382   :  { %v497_v58 = vpack.c.bf16 %v496_v57, %v495_v56 }
 0x383   :  { %v2749_v59 = vpop.eup %2748  ;;  %v391_v61 = vmul.f32 1.442695, %v377_v55  ;;  %v494_v55 = vld [vmem:[%s3473_s4] sm:$0xf] }
 0x384   :  { %2539 = vmatmul.mubr.msk.bf16.vlgmr.msra.gmra.mrb[12].mxu0 %vm165_vm3, %v497_v58  ;;  %v398_v62 = vsel %vm165_vm3, %v2749_v59, 0.0  ;;  %v370_v11 = vpop.xlane.xlu1 %369  ;;  %v600_v56 = vsel %vm551_vm4, %v494_v55, 0  ;;  %v2363_v58 = vld [vmem:[%s3473_s4 + $0x8] sm:$0xf] }
 0x385   :  { %2752 = vpow2.f32 %v391_v61  ;;  %399 = vadd.xlane.f32.xlu1 %v398_v62  ;;  %2550 = vmatprep.mubr.msk.bf16.mxu0 %vm2863_vm0, %v2862_v1  ;;  %v378_v12 = vsub.f32 %v346_v31, %v370_v11  ;;  %v2366_v11 = vld [vmem:[%s3473_s4 + $0xc] sm:$0xf] }
 0x386   :  { %2754 = vpow2.f32 %v389_v60  ;;  %2549 = vmatpush3.bf16.msra.mxu0 %v600_v56 }
 0x387   :  { %v2751_v63 = vpop.eup %2750  ;;  %v393_v13 = vmul.f32 1.442695, %v378_v12  ;;  %2560 = vmatprep.subr.bf16.mxu0 %v2862_v1 }
 0x388   :  { %v407_v0 = vsel %vm165_vm3, %v2751_v63, 0.0 }
 0x389   :  { %408 = vadd.xlane.f32.xlu1 %v407_v0  ;;  %2756 = vpow2.f32 %v393_v13 }
 0x38f   :  { %v2753_v2 = vpop.eup %2752 }
 0x390   :  { %v413_v5 = vsel %vm165_vm3, %v2753_v2, 0.0  ;;  %v2755_v6 = vpop.eup %2754 }
 0x391   :  { %414 = vadd.xlane.f32.xlu1 %v413_v5  ;;  %v410_v10 = vsel %vm165_vm3, %v2755_v6, 0.0 }
 0x393   :  { %v2757_v14 = vpop.eup %2756 }
 0x394   :  { %v416_v15 = vsel %vm165_vm3, %v2757_v14, 0.0 }
 0x395   :  { %411 = vadd.xlane.f32.xlu1 %v410_v10 }
 0x397   :  { %646 = vrot.lane.b32.xlu0 %v2972_v17, %s2872_s14 }
 0x3a6   :  { %446 = vrot.lane.b32.xlu1 %v2972_v17, %s2873_s15 }
 0x3ca   :  { %417 = vadd.xlane.f32.xlu1 %v416_v15 }
 0x3db   :  { %748 = vrot.lane.b32.xlu1 %v2972_v17, %s2874_s16  ;;  %v2359_v17 = vld [vmem:[%s3473_s4 + $0x4] sm:$0xf] }
 0x3dc   :  { %v553_v33 = vsel %vm551_vm4, %v2359_v17, 0 }
 0x40e   :  { %v397_v16 = vpop.xlane.xlu0 %396 }
 0x40f   :  { %2758 = vrcp.f32 %v397_v16  ;;  %v802_v16 = vsel %vm551_vm4, %v2366_v11, 0  ;;  %v3137_v11 = vld [vmem:[%s3476_s7 + $0x8] sm:$0x7] }
 0x412   :  { %v400_v18 = vpop.xlane.xlu1 %399  ;;  %v647_v45 = vpop.permute.xlu0 %646 }
 0x413   :  { %2760 = vrcp.f32 %v400_v18 }
 0x416   :  { %v409_v19 = vpop.xlane.xlu1 %408 }
 0x417   :  { %2762 = vrcp.f32 %v409_v19 }
 0x419   :  { %v2759_v20 = vpop.eup %2758 }
 0x41a   :  { %v427_v21 = vmul.f32 %v2759_v20, %v2747_v51 }
 0x41c   :  { %435 = vst.msk [vmem:[#allocation2] sm:$0xff] %vm165_vm3, %v427_v21 }
 0x41d   :  { %v2761_v22 = vpop.eup %2760 }
 0x41e   :  { %v428_v23 = vmul.f32 %v2761_v22, %v2749_v59  ;;  %v415_v24 = vpop.xlane.xlu1 %414 }
 0x41f   :  { %2764 = vrcp.f32 %v415_v24 }
 0x420   :  { %436 = vst.msk [vmem:[#allocation2 + $0x8] sm:$0xff] %vm165_vm3, %v428_v23 }
 0x421   :  { %v2763_v25 = vpop.eup %2762 }
 0x422   :  { %v431_v26 = vmul.f32 %v2763_v25, %v2751_v63  ;;  %v412_v27 = vpop.xlane.xlu1 %411  ;;  %v700_v63 = vsel %vm551_vm4, %v2363_v58, 0 }
 0x423   :  { %2766 = vrcp.f32 %v412_v27  ;;  %v443_v30 = vld [vmem:[#allocation2] sm:$0xff] }
 0x424   :  { %439 = vst.msk [vmem:[#allocation2 + $0x20] sm:$0xff] %vm165_vm3, %v431_v26 }
 0x426   :  { %v447_v28 = vpop.permute.xlu1 %446 }
 0x427   :  { %2531 = vmatpush3.bf16.msra.mxu1 %v447_v28  ;;  %v444_v31 = vld [vmem:[#allocation2 + $0x8] sm:$0xff] }
 0x428   :  { %v445_v32 = vpack.c.bf16 %v444_v31, %v443_v30  ;;  %2542 = vmatprep.subr.bf16.mxu1 %v2862_v1 }
 0x429   :  { %v2765_v34 = vpop.eup %2764 }
 0x42a   :  { %v433_v35 = vmul.f32 %v2765_v34, %v2753_v2  ;;  %2533 = vmatmul.mubr.msk.bf16.vlgmr.msra.gmra.mrb[8].mxu1 %vm165_vm3, %v445_v32 }
 0x42b   :  { %2543 = vmatpush3.bf16.msra.mxu1 %v553_v33  ;;  %2544 = vmatprep.mubr.msk.bf16.mxu1 %vm2863_vm0, %v2862_v1  ;;  %v643_v47 = vld [vmem:[#allocation2 + $0x20] sm:$0xff] }
 0x42c   :  { %441 = vst.msk [vmem:[#allocation2 + $0x30] sm:$0xff] %vm165_vm3, %v433_v35  ;;  %2554 = vmatprep.subr.bf16.mxu1 %v2862_v1  ;;  %v3116_v35 = vsub.s32 1, %v2960_v7 }
 0x42d   :  { %v2767_v37 = vpop.eup %2766 }
 0x42e   :  { %v432_v38 = vmul.f32 %v2767_v37, %v2755_v6  ;;  %v850_v37 = vrot.slane %v2968_v9, %v3116_v35 }
 0x430   :  { %440 = vst.msk [vmem:[#allocation2 + $0x28] sm:$0xff] %vm165_vm3, %v432_v38 }
 0x433   :  { %v745_v52 = vld [vmem:[#allocation2 + $0x30] sm:$0xff] }
 0x437   :  { %v644_v46 = vld [vmem:[#allocation2 + $0x28] sm:$0xff] }
 0x438   :  { %v645_v49 = vpack.c.bf16 %v644_v46, %v643_v47 }
 0x457   :  { %v418_v39 = vpop.xlane.xlu1 %417  ;;  %v538_v40 = vpop.f32.mrb[12].mxu0 }
 0x458   :  { %2768 = vrcp.f32 %v418_v39  ;;  %v2540_v41 = vpop.f32.mrb[13].mxu0 }
 0x459   :  { %v541_v42 = vpop.f32.mrb[14].mxu0 }
 0x45a   :  { %v545_v43 = vpack.c.bf16 %v541_v42, %v538_v40  ;;  %v2541_v44 = vpop.f32.mrb[15].mxu0 }
 0x45b   :  { %v749_v51 = vpop.permute.xlu1 %748 }
 0x45c   :  { %2545 = vmatmul.mubr.msk.bf16.vlgmr.msra.gmra.mrb[12].mxu1 %vm113_vm2, %v545_v43 }
 0x45d   :  { %2555 = vmatpush3.bf16.msra.mxu1 %v647_v45  ;;  %2556 = vmatprep.mubr.msk.bf16.mxu1 %vm2863_vm0, %v2862_v1 }
 0x45e   :  { %2566 = vmatprep.subr.bf16.mxu1 %v2862_v1 }
 0x462   :  { %v2769_v48 = vpop.eup %2768 }
 0x463   :  { %v434_v50 = vmul.f32 %v2769_v48, %v2757_v14 }
 0x464   :  { %2557 = vmatmul.mubr.msk.bf16.vlgmr.msra.gmra.mrb[16].mxu1 %vm165_vm3, %v645_v49 }
 0x465   :  { %442 = vst.msk [vmem:[#allocation2 + $0x38] sm:$0xff] %vm165_vm3, %v434_v50  ;;  %2567 = vmatpush3.bf16.msra.mxu1 %v749_v51  ;;  %2568 = vmatprep.mubr.msk.bf16.mxu1 %vm2863_vm0, %v2862_v1 }
 0x466   :  { %2578 = vmatprep.subr.bf16.mxu1 %v2862_v1 }
 0x46c   :  { %v746_v53 = vld [vmem:[#allocation2 + $0x38] sm:$0xff] }
 0x46d   :  { %v747_v54 = vpack.c.bf16 %v746_v53, %v745_v52 }
 0x46f   :  { %2569 = vmatmul.mubr.msk.bf16.vlgmr.msra.gmra.mrb[20].mxu1 %vm165_vm3, %v747_v54 }
 0x470   :  { %2582 = vmatprep.mubr.msk.bf16.mxu1 %vm2863_vm0, %v2862_v1 }
 0x4fd   :  { %v486_v57 = vpop.f32.mrb[8].mxu1 }
 0x4fe   :  { %v2534_v59 = vpop.f32.mrb[9].mxu1 }
 0x4ff   :  { %v489_v60 = vpop.f32.mrb[10].mxu1 }
 0x500   :  { %v493_v61 = vpack.c.bf16 %v489_v60, %v486_v57  ;;  %v2535_v62 = vpop.f32.mrb[11].mxu1 }
 0x502   :  { %2551 = vmatmul.mubr.msk.bf16.vlgmr.msra.gmra.mrb[16].mxu0 %vm113_vm2, %v493_v61 }
 0x503   :  { %2561 = vmatpush3.bf16.msra.mxu0 %v700_v63  ;;  %2562 = vmatprep.mubr.msk.bf16.mxu0 %vm2863_vm0, %v2862_v1 }
 0x504   :  { %2572 = vmatprep.subr.bf16.mxu0 %v2862_v1 }
 0x52f   :  { %v589_v0 = vpop.f32.mrb[12].mxu1 }
 0x530   :  { %v2546_v2 = vpop.f32.mrb[13].mxu1 }
 0x531   :  { %v592_v5 = vpop.f32.mrb[14].mxu1  ;;  %v890_v2 = vsub.s32 5, %v2960_v7 }
 0x532   :  { %v2547_v6 = vpop.f32.mrb[15].mxu1 }
 0x533   :  { %v3132_v6 = vsub.s32 2, %v2960_v7 }
 0x537   :  { %v686_v10 = vpop.f32.mrb[16].mxu1 }
 0x538   :  { %v2558_v12 = vpop.f32.mrb[17].mxu1 }
 0x539   :  { %v689_v13 = vpop.f32.mrb[18].mxu1 }
 0x53a   :  { %v693_v14 = vpack.c.bf16 %v689_v13, %v686_v10  ;;  %v2559_v15 = vpop.f32.mrb[19].mxu1  ;;  %v891_v13 = vrot.slane %v2968_v9, %v890_v2 }
 0x53c   :  { %2563 = vmatmul.mubr.msk.bf16.vlgmr.msra.gmra.mrb[20].mxu0 %vm113_vm2, %v693_v14 }
 0x53d   :  { %2573 = vmatpush3.bf16.msra.mxu0 %v802_v16  ;;  %2574 = vmatprep.mubr.msk.bf16.mxu0 %vm2863_vm0, %v2862_v1  ;;  %v897_v16 = vrot.slane %v3137_v11, %v3132_v6 }
 0x53e   :  { %2586 = vmatprep.subr.bf16.mxu0 %v2862_v1 }
 0x542   :  { %v788_v18 = vpop.f32.mrb[20].mxu1 }
 0x543   :  { %v2570_v19 = vpop.f32.mrb[21].mxu1 }
 0x544   :  { %v791_v20 = vpop.f32.mrb[22].mxu1 }
 0x545   :  { %v795_v21 = vpack.c.bf16 %v791_v20, %v788_v18  ;;  %v2571_v22 = vpop.f32.mrb[23].mxu1 }
 0x547   :  { %2575 = vmatmul.mubr.msk.bf16.vlgmr.msra.gmra.mrb[24].mxu0 %vm113_vm2, %v795_v21 }
 0x548   :  { %2594 = vmatprep.mubr.msk.bf16.mxu0 %vm2863_vm0, %v2862_v1 }
 0x5d5   :  { %v636_v23 = vpop.f32.mrb[16].mxu0 }
 0x5d6   :  { %v637_v24 = vadd.f32 %v636_v23, %v589_v0  ;;  %v2552_v25 = vpop.f32.mrb[17].mxu0  ;;  %v884_v0 = vsub.s32 4, %v2960_v7 }
 0x5d7   :  { %v639_v26 = vpop.f32.mrb[18].mxu0 }
 0x5d8   :  { %v640_v27 = vadd.f32 %v639_v26, %v592_v5  ;;  %v2553_v17 = vpop.f32.mrb[19].mxu0  ;;  %v885_v5 = vrot.slane %v2968_v9, %v884_v0 }
 0x60f   :  { %v736_v28 = vpop.f32.mrb[20].mxu0 }
 0x610   :  { %v743_v30 = vadd.f32 %v736_v28, %v637_v24  ;;  %v2564_v31 = vpop.f32.mrb[21].mxu0 }
 0x611   :  { %v739_v32 = vpop.f32.mrb[22].mxu0 }
 0x612   :  { %v744_v33 = vadd.f32 %v739_v32, %v640_v27  ;;  %v2565_v34 = vpop.f32.mrb[23].mxu0 }
 0x61a   :  { %v838_v38 = vpop.f32.mrb[24].mxu0 }
 0x61b   :  { %v845_v39 = vadd.f32 %v838_v38, %v743_v30  ;;  %v2576_v40 = vpop.f32.mrb[25].mxu0  ;;  %v2722_v38 = vld [vmem:[%s3474_s5] sm:$0xff]  }
 0x61c   :  { %v841_v41 = vpop.f32.mrb[26].mxu0  ;;  %2579 = vmatpush3.bf16.msra.mxu1 %v2722_v38  ;;  %v2724_v40 = vld [vmem:[%s3475_s6] sm:$0xff]  }
 0x61d   :  { %v851_v42 = vadd.f32 %v850_v37, %v845_v39  ;;  %v846_v43 = vadd.f32 %v841_v41, %v744_v33  ;;  %v2577_v44 = vpop.f32.mrb[27].mxu0  ;;  %v2723_v39 = vld [vmem:[%s3474_s5 + $0x8] sm:$0xff]   ;;  %2580 = vmatprep.subr.bf16.mxu1 %v2862_v1  ;;  %2587 = vmatpush3.bf16.msra.mxu0 %v2724_v40 }
 0x61e   :  { %v2725_v41 = vld [vmem:[%s3475_s6 + $0x8] sm:$0xff]   ;;  %2588 = vmatprep.subr.bf16.mxu0 %v2862_v1 }
 0x61f   :  { %v852_v45 = vadd.f32 %v850_v37, %v846_v43  ;;  %v853_v46 = vadd.f32 %v851_v42, %v2944_v3 }
 0x620   :  { %2581 = vmatpush3.bf16.msra.mxu1 %v2723_v39 }
 0x621   :  { %v855_v47 = vsel %vm64_vm1, %v853_v46, 0.0  ;;  %v854_v48 = vadd.f32 %v852_v45, %v2949_v4  ;;  %2598 = vmatprep.subr.bf16.mxu1 %v2862_v1  ;;  %2589 = vmatpush3.bf16.msra.mxu0 %v2725_v41  ;;  %v2728_v41 = vld [vmem:[%s3472_s3 + $0x10] sm:$0xff]  }
 0x622   :  { %856 = vadd.xlane.f32.xlu1 %v855_v47  ;;  %2590 = vmatprep.subr.bf16.mxu0 %v2862_v1 }
 0x623   :  { %v858_v49 = vsel %vm64_vm1, %v854_v48, 0.0 }
 0x624   :  { %859 = vadd.xlane.f32.xlu0 %v858_v49 }
 0x6af   :  { %v857_v50 = vpop.xlane.xlu1 %856 }
 0x6b0   :  { %v862_v51 = vmul.f32 0.03125, %v857_v50  ;;  %v934_v50 = vsub.s32 7, %v2960_v7 }
 0x6b1   :  { %v860_v52 = vpop.xlane.xlu0 %859 }
 0x6b2   :  { %v864_v53 = vsub.f32 %v853_v46, %v862_v51  ;;  %v863_v54 = vmul.f32 0.03125, %v860_v52 }
 0x6b4   :  { %v865_v55 = vsub.f32 %v854_v48, %v863_v54  ;;  %v866_v56 = vmul.f32 %v864_v53, %v864_v53  ;;  %v928_v48 = vsub.s32 6, %v2960_v7 }
 0x6b6   :  { %v868_v57 = vsel %vm64_vm1, %v866_v56, 0.0  ;;  %v867_v58 = vmul.f32 %v865_v55, %v865_v55  ;;  %v929_v49 = vrot.slane %v2968_v9, %v928_v48  ;;  %v935_v56 = vrot.slane %v2968_v9, %v934_v50 }
 0x6b7   :  { %869 = vadd.xlane.f32.xlu1 %v868_v57 }
 0x6b8   :  { %v871_v3 = vsel %vm64_vm1, %v867_v58, 0.0 }
 0x6b9   :  { %872 = vadd.xlane.f32.xlu0 %v871_v3 }
 0x744   :  { %v870_v59 = vpop.xlane.xlu1 %869 }
 0x745   :  { %v874_v4 = vmul.f32 0.03125, %v870_v59 }
 0x746   :  { %v873_v60 = vpop.xlane.xlu0 %872 }
 0x747   :  { %v876_v61 = vadd.f32 1e-05, %v874_v4  ;;  %v875_v62 = vmul.f32 0.03125, %v873_v60  ;;  %v2726_v4 = vld [vmem:[%s3475_s6 + $0x10] sm:$0xff]   ;;  %v2727_v60 = vld [vmem:[%s3475_s6 + $0x18] sm:$0xff]  }
 0x748   :  { %2591 = vmatpush3.bf16.msra.mxu0 %v2726_v4 }
 0x749   :  { %2770 = vrsqrt.f32 %v876_v61  ;;  %v877_v63 = vadd.f32 1e-05, %v875_v62  ;;  %2592 = vmatprep.subr.bf16.mxu0 %v2862_v1  ;;  %v946_v61 = vrot.slane %v2968_v9, %v3132_v6 }
 0x74b   :  { %2772 = vrsqrt.f32 %v877_v63 }
 0x74c   :  { %2593 = vmatpush3.bf16.msra.mxu0 %v2727_v60  ;;  %v3220_v60 = vld [vmem:[%s3476_s7 + $0x10] sm:$0xff] }
 0x74d   :  { %2612 = vmatprep.subr.bf16.mxu0 %v2862_v1 }
 0x753   :  { %v2771_v10 = vpop.eup %2770 }
 0x754   :  { %v880_v12 = vmul.f32 %v2771_v10, %v864_v53 }
 0x755   :  { %v2773_v14 = vpop.eup %2772 }
 0x756   :  { %v886_v15 = vmul.f32 %v885_v5, %v880_v12  ;;  %v881_v18 = vmul.f32 %v2773_v14, %v865_v55 }
 0x758   :  { %v892_v19 = vadd.f32 %v891_v13, %v886_v15  ;;  %v887_v20 = vmul.f32 %v885_v5, %v881_v18  ;;  %v1016_v18 = vsub.s32 3, %v2960_v7 }
 0x75a   :  { %v898_v21 = vadd.f32 %v897_v16, %v892_v19  ;;  %v893_v22 = vadd.f32 %v891_v13, %v887_v20  ;;  %v1017_v19 = vrot.slane %v2968_v9, %v1016_v18 }
 0x75c   :  { %v900_v23 = vsel %vm64_vm1, %v898_v21, 0.0  ;;  %v899_v24 = vadd.f32 %v897_v16, %v893_v22 }
 0x75d   :  { %901 = vadd.xlane.f32.xlu1 %v900_v23 }
 0x75e   :  { %v903_v25 = vsel %vm64_vm1, %v899_v24, 0.0 }
 0x75f   :  { %904 = vadd.xlane.f32.xlu0 %v903_v25 }
 0x7ea   :  { %v902_v26 = vpop.xlane.xlu1 %901 }
 0x7eb   :  { %v906_v27 = vmul.f32 0.03125, %v902_v26 }
 0x7ec   :  { %v905_v17 = vpop.xlane.xlu0 %904 }
 0x7ed   :  { %v908_v28 = vsub.f32 %v898_v21, %v906_v27  ;;  %v907_v30 = vmul.f32 0.03125, %v905_v17 }
 0x7ef   :  { %v909_v31 = vsub.f32 %v899_v24, %v907_v30  ;;  %v910_v32 = vmul.f32 %v908_v28, %v908_v28 }
 0x7f1   :  { %v912_v33 = vsel %vm64_vm1, %v910_v32, 0.0  ;;  %v911_v34 = vmul.f32 %v909_v31, %v909_v31 }
 0x7f2   :  { %913 = vadd.xlane.f32.xlu1 %v912_v33 }
 0x7f3   :  { %v915_v37 = vsel %vm64_vm1, %v911_v34, 0.0 }
 0x7f4   :  { %916 = vadd.xlane.f32.xlu0 %v915_v37 }
 0x87f   :  { %v914_v42 = vpop.xlane.xlu1 %913 }
 0x880   :  { %v918_v43 = vmul.f32 0.03125, %v914_v42  ;;  %v2729_v42 = vld [vmem:[%s3472_s3 + $0x18] sm:$0xff]  }
 0x881   :  { %v917_v44 = vpop.xlane.xlu0 %916 }
 0x882   :  { %v920_v45 = vadd.f32 1e-05, %v918_v43  ;;  %v919_v46 = vmul.f32 0.03125, %v917_v44 }
 0x884   :  { %2774 = vrsqrt.f32 %v920_v45  ;;  %v921_v47 = vadd.f32 1e-05, %v919_v46 }
 0x886   :  { %2776 = vrsqrt.f32 %v921_v47 }
 0x88e   :  { %v2775_v51 = vpop.eup %2774 }
 0x88f   :  { %v924_v52 = vmul.f32 %v2775_v51, %v908_v28  ;;  %v1118_v51 = vrot.slane %v3137_v11, %v2963_v8 }
 0x890   :  { %v2777_v53 = vpop.eup %2776 }
 0x891   :  { %v930_v54 = vmul.f32 %v929_v49, %v924_v52  ;;  %v925_v55 = vmul.f32 %v2777_v53, %v909_v31 }
 0x893   :  { %v931_v57 = vmul.f32 %v929_v49, %v925_v55  ;;  %v936_v58 = vadd.f32 %v935_v56, %v930_v54  ;;  %v1124_v55 = vrot.slane %v3137_v11, %v3116_v35  ;;  %v1139_v11 = vrot.slane %v3220_v60, %v2963_v8 }
 0x895   :  { %v937_v3 = vadd.f32 %v935_v56, %v931_v57 }
 0x897   :  { %v938_v59 = vpack.c.bf16 %v937_v3, %v936_v58 }
 0x899   :  { %2583 = vmatmul.mubr.msk.bf16.vlgmr.msra.gmra.mrb[24].mxu1 %vm64_vm1, %v938_v59 }
 0x89a   :  { %2602 = vmatprep.mubr.msk.bf16.mxu1 %vm2863_vm0, %v2862_v1  ;;  %2599 = vmatpush3.bf16.msra.mxu1 %v2728_v41 }
 0x89b   :  { %2600 = vmatprep.subr.bf16.mxu1 %v2862_v1 }
 0x89e   :  { %2601 = vmatpush3.bf16.msra.mxu1 %v2729_v42 }
 0x89f   :  { %2606 = vmatprep.subr.bf16.mxu1 %v2862_v1 }
 0x96c   :  { %v996_v62 = vpop.f32.mrb[24].mxu1 }
 0x96d   :  { %v997_v63 = vadd.f32 %v996_v62, %v946_v61  ;;  %v2584_v5 = vpop.f32.mrb[25].mxu1 }
 0x96e   :  { %v999_v10 = vpop.f32.mrb[26].mxu1 }
 0x96f   :  { %v1000_v12 = vadd.f32 %v999_v10, %v946_v61  ;;  %v2585_v13 = vpop.f32.mrb[27].mxu1  ;;  %v1003_v14 = vmax.f32 %v997_v63, 0.0 }
 0x971   :  { %v1004_v15 = vmax.f32 %v1000_v12, 0.0 }
 0x973   :  { %v1005_v16 = vpack.c.bf16 %v1004_v15, %v1003_v14 }
 0x975   :  { %2595 = vmatmul.mubr.msk.bf16.vlgmr.msra.gmra.mrb[28].mxu0 %vm1042_vm5, %v1005_v16 }
 0x976   :  { %2614 = vmatprep.mubr.msk.bf16.mxu0 %vm2863_vm0, %v2862_v1 }
 0xa48   :  { %v1080_v20 = vpop.f32.mrb[28].mxu0 }
 0xa49   :  { %v1081_v21 = vadd.f32 %v1080_v20, %v1017_v19  ;;  %v2596_v22 = vpop.f32.mrb[29].mxu0 }
 0xa4a   :  { %v1083_v23 = vpop.f32.mrb[30].mxu0 }
 0xa4b   :  { %v1084_v24 = vadd.f32 %v1083_v23, %v1017_v19  ;;  %v2597_v25 = vpop.f32.mrb[31].mxu0  ;;  %v1087_v26 = vadd.f32 %v1081_v21, %v936_v58 }
 0xa4d   :  { %v1089_v27 = vsel %vm64_vm1, %v1087_v26, 0.0  ;;  %v1088_v17 = vadd.f32 %v1084_v24, %v937_v3 }
 0xa4e   :  { %1090 = vadd.xlane.f32.xlu1 %v1089_v27 }
 0xa4f   :  { %v1092_v28 = vsel %vm64_vm1, %v1088_v17, 0.0 }
 0xa50   :  { %1093 = vadd.xlane.f32.xlu0 %v1092_v28 }
 0xadb   :  { %v1091_v30 = vpop.xlane.xlu1 %1090 }
 0xadc   :  { %v1095_v31 = vmul.f32 0.03125, %v1091_v30 }
 0xadd   :  { %v1094_v32 = vpop.xlane.xlu0 %1093 }
 0xade   :  { %v1097_v33 = vsub.f32 %v1087_v26, %v1095_v31  ;;  %v1096_v34 = vmul.f32 0.03125, %v1094_v32 }
 0xae0   :  { %v1098_v9 = vsub.f32 %v1088_v17, %v1096_v34  ;;  %v1099_v37 = vmul.f32 %v1097_v33, %v1097_v33 }
 0xae2   :  { %v1101_v38 = vsel %vm64_vm1, %v1099_v37, 0.0  ;;  %v1100_v39 = vmul.f32 %v1098_v9, %v1098_v9 }
 0xae3   :  { %1102 = vadd.xlane.f32.xlu1 %v1101_v38 }
 0xae4   :  { %v1104_v40 = vsel %vm64_vm1, %v1100_v39, 0.0 }
 0xae5   :  { %1105 = vadd.xlane.f32.xlu0 %v1104_v40 }
 0xb70   :  { %v1103_v43 = vpop.xlane.xlu1 %1102 }
 0xb71   :  { %v1107_v44 = vmul.f32 0.03125, %v1103_v43 }
 0xb72   :  { %v1106_v45 = vpop.xlane.xlu0 %1105 }
 0xb73   :  { %v1109_v46 = vadd.f32 1e-05, %v1107_v44  ;;  %v1108_v47 = vmul.f32 0.03125, %v1106_v45 }
 0xb75   :  { %2778 = vrsqrt.f32 %v1109_v46  ;;  %v1110_v49 = vadd.f32 1e-05, %v1108_v47 }
 0xb77   :  { %2780 = vrsqrt.f32 %v1110_v49 }
 0xb7f   :  { %v2779_v52 = vpop.eup %2778 }
 0xb80   :  { %v1113_v53 = vmul.f32 %v2779_v52, %v1097_v33 }
 0xb81   :  { %v2781_v54 = vpop.eup %2780 }
 0xb82   :  { %v1119_v56 = vmul.f32 %v1118_v51, %v1113_v53  ;;  %v1114_v57 = vmul.f32 %v2781_v54, %v1098_v9 }
 0xb84   :  { %v1120_v58 = vmul.f32 %v1118_v51, %v1114_v57  ;;  %v3208_v3 = vadd.f32 %v1124_v55, %v1119_v56 }
 0xb86   :  { %v3210_v59 = vadd.f32 %v1124_v55, %v1120_v58 }
 0xb88   :  { %v1130_v4 = vpack.c.bf16 %v3210_v59, %v3208_v3 }
 0xb8a   :  { %2603 = vmatmul.mubr.msk.bf16.vlgmr.msra.gmra.mrb[28].mxu1 %vm64_vm1, %v1130_v4 }
 0xb8b   :  { %2608 = vmatprep.mubr.msk.bf16.mxu1 %vm2863_vm0, %v2862_v1 }
 0xc5d   :  { %v1189_v61 = vpop.f32.mrb[28].mxu1 }
 0xc5e   :  { %v2604_v62 = vpop.f32.mrb[29].mxu1  ;;  %v1190_v5 = vadd.f32 %v1189_v61, %v1139_v11 }
 0xc5f   :  { %v1192_v63 = vpop.f32.mrb[30].mxu1 }
 0xc60   :  { %v1193_v10 = vadd.f32 %v1192_v63, %v1139_v11  ;;  %v2605_v12 = vpop.f32.mrb[31].mxu1 }
 0xc62   :  { %v3224_v13 = vpack.c.bf16 %v1193_v10, %v1190_v5  ;;  %v2837_v10 = vld [vmem:[%s3470_s1 + $0x8] sm:$0xff] }
 0xc64   :  { %1253 = vrot.lane.b32.xlu0 %v3224_v13, %s2867_s25  ;;  %1255 = vrot.lane.b32.xlu1 %v3224_v13, %s2865_s23 }
 0xc68   :  { %1369 = vrot.lane.b32.xlu0 %v3224_v13, %s2868_s26  ;;  %1198 = vrot.lane.b32.xlu1 %v3224_v13, %s2864_s22 }
 0xc6c   :  { %1312 = vrot.lane.b32.xlu1 %v3224_v13, %s2866_s24 }
 0xc70   :  { %1310 = vrot.lane.b32.xlu1 %v3224_v13, %s2869_s27 }
 0xc74   :  { %1367 = vrot.lane.b32.xlu1 %v3224_v13, %s2870_s28 }
 0xcd6   :  { %v1254_v14 = vpop.permute.xlu0 %1253  ;;  %v1256_v15 = vpop.permute.xlu1 %1255 }
 0xcd7   :  { %v1261_v16 = vsel %vm113_vm2, %v1256_v15, 0 }
 0xcd8   :  { %2613 = vmatpush3.bf16.xpose.msra.mxu0 %v1261_v16 }
 0xcd9   :  { %2624 = vmatprep.subr.bf16.mxu0 %v2862_v1 }
 0xcda   :  { %v1199_v19 = vpop.permute.xlu1 %1198  ;;  %v1370_v21 = vpop.permute.xlu0 %1369 }
 0xcdb   :  { %v1204_v20 = vsel %vm113_vm2, %v1199_v19, 0  ;;  %v1375_v23 = vsel %vm113_vm2, %v1370_v21, 0 }
 0xcdc   :  { %2607 = vmatpush3.bf16.xpose.msra.mxu1 %v1204_v20 }
 0xcdd   :  { %2618 = vmatprep.subr.bf16.mxu1 %v2862_v1 }
 0xcde   :  { %v1313_v22 = vpop.permute.xlu1 %1312 }
 0xcdf   :  { %2615 = vmatmul.mubr.msk.bf16.vlgmr.msra.gmra.mrb[32].mxu0 %vm113_vm2, %v1254_v14  ;;  %v1318_v25 = vsel %vm113_vm2, %v1313_v22, 0 }
 0xce0   :  { %2625 = vmatpush3.bf16.xpose.msra.mxu0 %v1375_v23  ;;  %2626 = vmatprep.mubr.msk.bf16.mxu0 %vm2863_vm0, %v2862_v1 }
 0xce1   :  { %2636 = vmatprep.subr.bf16.mxu0 %v2862_v1 }
 0xce2   :  { %v1311_v24 = vpop.permute.xlu1 %1310 }
 0xce3   :  { %2609 = vmatmul.mubr.msk.bf16.vlgmr.msra.gmra.mrb[32].mxu1 %vm113_vm2, %v3224_v13 }
 0xce4   :  { %2619 = vmatpush3.bf16.xpose.msra.mxu1 %v1318_v25  ;;  %2620 = vmatprep.mubr.msk.bf16.mxu1 %vm2863_vm0, %v2862_v1 }
 0xce5   :  { %2630 = vmatprep.subr.bf16.mxu1 %v2862_v1 }
 0xce6   :  { %v1368_v26 = vpop.permute.xlu1 %1367 }
 0xce7   :  { %2627 = vmatmul.mubr.msk.bf16.vlgmr.msra.gmra.mrb[36].mxu0 %vm113_vm2, %v1368_v26 }
 0xce8   :  { %2638 = vmatprep.mubr.msk.bf16.mxu0 %vm2863_vm0, %v2862_v1 }
 0xceb   :  { %2621 = vmatmul.mubr.msk.bf16.vlgmr.msra.gmra.mrb[36].mxu1 %vm113_vm2, %v1311_v24 }
 0xcec   :  { %2632 = vmatprep.mubr.msk.bf16.mxu1 %vm2863_vm0, %v2862_v1 }
 0xdb2   :  { %v1297_v27 = vpop.f32.mrb[32].mxu0 }
 0xdb3   :  { %v1304_v17 = vmul.f32 0.35355338, %v1297_v27  ;;  %v2616_v28 = vpop.f32.mrb[33].mxu0 }
 0xdb4   :  { %v1300_v30 = vpop.f32.mrb[34].mxu0 }
 0xdb5   :  { %v1306_v31 = vadd.f32 %v1304_v17, %v3012_v29  ;;  %v1305_v32 = vmul.f32 0.35355338, %v1300_v30  ;;  %v2617_v33 = vpop.f32.mrb[35].mxu0 }
 0xdb6   :  { %v1240_v34 = vpop.f32.mrb[32].mxu1 }
 0xdb7   :  { %1308 = vst.msk [vmem:[#allocation2 + $0x10] sm:$0xff] %vm165_vm3, %v1306_v31  ;;  %v1307_v9 = vadd.f32 %v1305_v32, %v3017_v36  ;;  %v1247_v37 = vmul.f32 0.35355338, %v1240_v34  ;;  %v2610_v38 = vpop.f32.mrb[33].mxu1 }
 0xdb8   :  { %v1243_v39 = vpop.f32.mrb[34].mxu1 }
 0xdb9   :  { %1309 = vst.msk [vmem:[#allocation2 + $0x18] sm:$0xff] %vm165_vm3, %v1307_v9  ;;  %v1249_v40 = vadd.f32 %v1247_v37, %v3012_v29  ;;  %v1248_v41 = vmul.f32 0.35355338, %v1243_v39  ;;  %v2611_v42 = vpop.f32.mrb[35].mxu1 }
 0xdba   :  { %v1411_v43 = vpop.f32.mrb[36].mxu0 }
 0xdbb   :  { %1251 = vst.msk [vmem:[#allocation2] sm:$0xff] %vm165_vm3, %v1249_v40  ;;  %v1250_v44 = vadd.f32 %v1248_v41, %v3017_v36  ;;  %v1418_v45 = vmul.f32 0.35355338, %v1411_v43  ;;  %v2628_v46 = vpop.f32.mrb[37].mxu0 }
 0xdbc   :  { %v1414_v47 = vpop.f32.mrb[38].mxu0 }
 0xdbd   :  { %1252 = vst.msk [vmem:[#allocation2 + $0x8] sm:$0xff] %vm165_vm3, %v1250_v44  ;;  %v1420_v49 = vadd.f32 %v1418_v45, %v3012_v29  ;;  %v1419_v51 = vmul.f32 0.35355338, %v1414_v47  ;;  %v2629_v52 = vpop.f32.mrb[39].mxu0  ;;  %v2836_v29 = vld [vmem:[%s3470_s1] sm:$0xff] }
 0xdbe   :  { %v1354_v53 = vpop.f32.mrb[36].mxu1  ;;  %v1426_v54 = vld [vmem:[#allocation2 + $0x10] sm:$0xff] }
 0xdbf   :  { %1422 = vst.msk [vmem:[#allocation2 + $0x30] sm:$0xff] %vm165_vm3, %v1420_v49  ;;  %v1421_v55 = vadd.f32 %v1419_v51, %v3017_v36  ;;  %v1361_v56 = vmul.f32 0.35355338, %v1354_v53  ;;  %v2622_v57 = vpop.f32.mrb[37].mxu1  ;;  %v1438_v58 = vsel %vm165_vm3, %v1426_v54, -inf }
 0xdc0   :  { %v1357_v4 = vpop.f32.mrb[38].mxu1  ;;  %1439 = vmax.xlane.f32.xlu0 %v1438_v58  ;;  %v1427_v11 = vld [vmem:[#allocation2 + $0x18] sm:$0xff] }
 0xdc1   :  { %1423 = vst.msk [vmem:[#allocation2 + $0x38] sm:$0xff] %vm165_vm3, %v1421_v55  ;;  %v1363_v61 = vadd.f32 %v2836_v29, %v1361_v56  ;;  %v1362_v62 = vmul.f32 0.35355338, %v1357_v4  ;;  %v2623_v63 = vpop.f32.mrb[39].mxu1  ;;  %v1441_v5 = vsel %vm165_vm3, %v1427_v11, -inf }
 0xdc2   :  { %1442 = vmax.xlane.f32.xlu1 %v1441_v5  ;;  %v3278_v36 = vld [vmem:[#allocation2] sm:$0xff] }
 0xdc3   :  { %1365 = vst.msk [vmem:[#allocation2 + $0x20] sm:$0xff] %vm165_vm3, %v1363_v61  ;;  %v1364_v12 = vadd.f32 %v2837_v10, %v1362_v62  ;;  %v1432_v14 = vsel %vm165_vm3, %v3278_v36, -inf }
 0xdc4   :  { %v1425_v15 = vld [vmem:[#allocation2 + $0x8] sm:$0xff] }
 0xdc5   :  { %1366 = vst.msk [vmem:[#allocation2 + $0x28] sm:$0xff] %vm165_vm3, %v1364_v12  ;;  %v1435_v16 = vsel %vm165_vm3, %v1425_v15, -inf }
 0xdc6   :  { %1433 = vmax.xlane.f32.xlu1 %v1432_v14  ;;  %v1430_v23 = vld [vmem:[#allocation2 + $0x30] sm:$0xff] }
 0xdc7   :  { %v1450_v24 = vsel %vm165_vm3, %v1430_v23, -inf }
 0xdc8   :  { %v1431_v25 = vld [vmem:[#allocation2 + $0x38] sm:$0xff] }
 0xdc9   :  { %v1453_v26 = vsel %vm165_vm3, %v1431_v25, -inf }
 0xdca   :  { %1436 = vmax.xlane.f32.xlu1 %v1435_v16  ;;  %v1428_v19 = vld [vmem:[#allocation2 + $0x20] sm:$0xff] }
 0xdcb   :  { %v1444_v20 = vsel %vm165_vm3, %v1428_v19, -inf }
 0xdcc   :  { %v1429_v21 = vld [vmem:[#allocation2 + $0x28] sm:$0xff] }
 0xdcd   :  { %v1447_v22 = vsel %vm165_vm3, %v1429_v21, -inf }
 0xdce   :  { %1445 = vmax.xlane.f32.xlu1 %v1444_v20 }
 0xdd2   :  { %1448 = vmax.xlane.f32.xlu1 %v1447_v22 }
 0xdd6   :  { %1451 = vmax.xlane.f32.xlu1 %v1450_v24 }
 0xdda   :  { %1454 = vmax.xlane.f32.xlu1 %v1453_v26 }
 0xe4d   :  { %v1440_v27 = vpop.xlane.xlu0 %1439 }
 0xe4e   :  { %v1458_v17 = vsub.f32 %v1426_v54, %v1440_v27 }
 0xe4f   :  { %v1443_v28 = vpop.xlane.xlu1 %1442 }
 0xe50   :  { %v1468_v30 = vmul.f32 1.442695, %v1458_v17  ;;  %v1459_v31 = vsub.f32 %v1427_v11, %v1443_v28 }
 0xe52   :  { %2782 = vpow2.f32 %v1468_v30  ;;  %v1470_v32 = vmul.f32 1.442695, %v1459_v31 }
 0xe53   :  { %v1434_v33 = vpop.xlane.xlu1 %1433 }
 0xe54   :  { %2784 = vpow2.f32 %v1470_v32  ;;  %v1456_v29 = vsub.f32 %v3278_v36, %v1434_v33 }
 0xe56   :  { %v1464_v61 = vmul.f32 1.442695, %v1456_v29 }
 0xe57   :  { %v1437_v34 = vpop.xlane.xlu1 %1436 }
 0xe58   :  { %v1457_v9 = vsub.f32 %v1425_v15, %v1437_v34 }
 0xe5a   :  { %v1466_v37 = vmul.f32 1.442695, %v1457_v9 }
 0xe5b   :  { %v1446_v38 = vpop.xlane.xlu1 %1445 }
 0xe5c   :  { %v2783_v39 = vpop.eup %2782  ;;  %2786 = vpow2.f32 %v1466_v37  ;;  %v1460_v40 = vsub.f32 %v1428_v19, %v1446_v38 }
 0xe5d   :  { %v1486_v41 = vsel %vm165_vm3, %v2783_v39, 0.0 }
 0xe5e   :  { %v2785_v42 = vpop.eup %2784  ;;  %v1472_v43 = vmul.f32 1.442695, %v1460_v40  ;;  %1487 = vadd.xlane.f32.xlu0 %v1486_v41 }
 0xe5f   :  { %v1449_v44 = vpop.xlane.xlu1 %1448  ;;  %v1489_v45 = vsel %vm165_vm3, %v2785_v42, 0.0 }
 0xe60   :  { %2788 = vpow2.f32 %v1472_v43  ;;  %v1461_v46 = vsub.f32 %v1429_v21, %v1449_v44  ;;  %v2392_v43 = vld [vmem:[%s3473_s4 + $0x14] sm:$0xf] }
 0xe62   :  { %1490 = vadd.xlane.f32.xlu0 %v1489_v45  ;;  %v1474_v52 = vmul.f32 1.442695, %v1461_v46 }
 0xe63   :  { %v1452_v47 = vpop.xlane.xlu1 %1451 }
 0xe64   :  { %v1462_v49 = vsub.f32 %v1430_v23, %v1452_v47 }
 0xe66   :  { %v2787_v51 = vpop.eup %2786  ;;  %v1476_v53 = vmul.f32 1.442695, %v1462_v49  ;;  %v1638_v49 = vsel %vm551_vm4, %v2392_v43, 0 }
 0xe67   :  { %v1483_v54 = vsel %vm165_vm3, %v2787_v51, 0.0  ;;  %v1455_v63 = vpop.xlane.xlu1 %1454 }
 0xe68   :  { %2790 = vpow2.f32 %v1476_v53  ;;  %1484 = vadd.xlane.f32.xlu1 %v1483_v54  ;;  %v1463_v10 = vsub.f32 %v1431_v25, %v1455_v63  ;;  %v2390_v53 = vld [vmem:[%s3473_s4 + $0x10] sm:$0xf] }
 0xe69   :  { %2792 = vpow2.f32 %v1474_v52  ;;  %v1685_v54 = vsel %vm551_vm4, %v2390_v53, 0 }
 0xe6a   :  { %v2789_v55 = vpop.eup %2788  ;;  %2794 = vpow2.f32 %v1464_v61  ;;  %v1478_v12 = vmul.f32 1.442695, %v1463_v10 }
 0xe6b   :  { %v1492_v56 = vsel %vm165_vm3, %v2789_v55, 0.0 }
 0xe6c   :  { %1493 = vadd.xlane.f32.xlu1 %v1492_v56  ;;  %2796 = vpow2.f32 %v1478_v12 }
 0xe72   :  { %v2791_v57 = vpop.eup %2790 }
 0xe73   :  { %v1498_v58 = vsel %vm165_vm3, %v2791_v57, 0.0  ;;  %v2793_v4 = vpop.eup %2792 }
 0xe74   :  { %1499 = vadd.xlane.f32.xlu1 %v1498_v58  ;;  %v1495_v11 = vsel %vm165_vm3, %v2793_v4, 0.0  ;;  %v2795_v62 = vpop.eup %2794 }
 0xe75   :  { %v1480_v5 = vsel %vm165_vm3, %v2795_v62, 0.0 }
 0xe76   :  { %v3304_v14 = vpop.eup %2796 }
 0xe77   :  { %v1501_v15 = vsel %vm165_vm3, %v3304_v14, 0.0 }
 0xe78   :  { %1584 = vrot.lane.b32.xlu0 %v3224_v13, %s2871_s13  ;;  %1496 = vadd.xlane.f32.xlu1 %v1495_v11 }
 0xe89   :  { %1531 = vrot.lane.b32.xlu1 %v3224_v13, %s2873_s15 }
 0xe97   :  { %1481 = vadd.xlane.f32.xlu0 %v1480_v5 }
 0xead   :  { %1731 = vrot.lane.b32.xlu0 %v3224_v13, %s2872_s14  ;;  %1502 = vadd.xlane.f32.xlu1 %v1501_v15 }
 0xebe   :  { %1833 = vrot.lane.b32.xlu1 %v3224_v13, %s2874_s16 }
 0xeeb   :  { %v1488_v36 = vpop.xlane.xlu0 %1487 }
 0xeec   :  { %2798 = vrcp.f32 %v1488_v36 }
 0xeef   :  { %v1491_v16 = vpop.xlane.xlu0 %1490 }
 0xef0   :  { %2800 = vrcp.f32 %v1491_v16 }
 0xef3   :  { %v1585_v19 = vpop.permute.xlu0 %1584 }
 0xef4   :  { %2637 = vmatpush3.bf16.msra.mxu0 %v1585_v19 }
 0xef5   :  { %v1485_v20 = vpop.xlane.xlu1 %1484  ;;  %2648 = vmatprep.subr.bf16.mxu0 %v2862_v1 }
 0xef6   :  { %v2799_v21 = vpop.eup %2798  ;;  %2802 = vrcp.f32 %v1485_v20  ;;  %v2396_v20 = vld [vmem:[%s3473_s4 + $0x18] sm:$0xf] }
 0xef7   :  { %v1514_v22 = vmul.f32 %v2799_v21, %v2783_v39  ;;  %v1785_v21 = vsel %vm551_vm4, %v2396_v20, 0 }
 0xef9   :  { %1522 = vst.msk [vmem:[#allocation2 + $0x10] sm:$0xff] %vm165_vm3, %v1514_v22  ;;  %v1494_v23 = vpop.xlane.xlu1 %1493 }
 0xefa   :  { %v2801_v24 = vpop.eup %2800  ;;  %2804 = vrcp.f32 %v1494_v23 }
 0xefb   :  { %v1515_v25 = vmul.f32 %v2801_v24, %v2785_v42 }
 0xefd   :  { %1523 = vst.msk [vmem:[#allocation2 + $0x18] sm:$0xff] %vm165_vm3, %v1515_v25 }
 0xf00   :  { %v2803_v13 = vpop.eup %2802  ;;  %v1581_v28 = vld [vmem:[#allocation2 + $0x10] sm:$0xff] }
 0xf01   :  { %v1513_v26 = vmul.f32 %v2803_v13, %v2787_v51  ;;  %v1500_v27 = vpop.xlane.xlu1 %1499 }
 0xf02   :  { %2806 = vrcp.f32 %v1500_v27 }
 0xf03   :  { %1521 = vst.msk [vmem:[#allocation2 + $0x8] sm:$0xff] %vm165_vm3, %v1513_v26  ;;  %v2399_v26 = vld [vmem:[%s3473_s4 + $0x1c] sm:$0xf] }
 0xf04   :  { %v2805_v17 = vpop.eup %2804  ;;  %v1582_v30 = vld [vmem:[#allocation2 + $0x18] sm:$0xff] }
 0xf05   :  { %v1516_v31 = vmul.f32 %v2805_v17, %v2789_v55  ;;  %v1497_v32 = vpop.xlane.xlu1 %1496  ;;  %v1583_v33 = vpack.c.bf16 %v1582_v30, %v1581_v28 }
 0xf06   :  { %2808 = vrcp.f32 %v1497_v32 }
 0xf07   :  { %1524 = vst.msk [vmem:[#allocation2 + $0x20] sm:$0xff] %vm165_vm3, %v1516_v31  ;;  %2639 = vmatmul.mubr.msk.bf16.vlgmr.msra.gmra.mrb[40].mxu0 %vm165_vm3, %v1583_v33  ;;  %v1887_v31 = vsel %vm551_vm4, %v2399_v26, 0 }
 0xf08   :  { %2650 = vmatprep.mubr.msk.bf16.mxu0 %vm2863_vm0, %v2862_v1  ;;  %2649 = vmatpush3.bf16.msra.mxu0 %v1685_v54 }
 0xf09   :  { %v1532_v34 = vpop.permute.xlu1 %1531  ;;  %2660 = vmatprep.subr.bf16.mxu0 %v2862_v1 }
 0xf0a   :  { %2631 = vmatpush3.bf16.msra.mxu1 %v1532_v34  ;;  %v1529_v45 = vld [vmem:[#allocation2 + $0x8] sm:$0xff] }
 0xf0b   :  { %2642 = vmatprep.subr.bf16.mxu1 %v2862_v1 }
 0xf0c   :  { %v2807_v9 = vpop.eup %2806 }
 0xf0d   :  { %v1518_v37 = vmul.f32 %v2807_v9, %v2791_v57 }
 0xf0e   :  { %v1728_v61 = vld [vmem:[#allocation2 + $0x20] sm:$0xff] }
 0xf0f   :  { %1526 = vst.msk [vmem:[#allocation2 + $0x30] sm:$0xff] %vm165_vm3, %v1518_v37 }
 0xf10   :  { %v2809_v38 = vpop.eup %2808 }
 0xf11   :  { %v1517_v39 = vmul.f32 %v2809_v38, %v2793_v4 }
 0xf13   :  { %1525 = vst.msk [vmem:[#allocation2 + $0x28] sm:$0xff] %vm165_vm3, %v1517_v39 }
 0xf16   :  { %v1830_v10 = vld [vmem:[#allocation2 + $0x30] sm:$0xff] }
 0xf1a   :  { %v1729_v29 = vld [vmem:[#allocation2 + $0x28] sm:$0xff] }
 0xf24   :  { %v1482_v40 = vpop.xlane.xlu0 %1481 }
 0xf25   :  { %2810 = vrcp.f32 %v1482_v40 }
 0xf28   :  { %v1732_v11 = vpop.permute.xlu0 %1731 }
 0xf2f   :  { %v2811_v41 = vpop.eup %2810 }
 0xf30   :  { %v1512_v42 = vmul.f32 %v2811_v41, %v2795_v62  ;;  %v1730_v62 = vpack.c.bf16 %v1729_v29, %v1728_v61 }
 0xf32   :  { %1520 = vst.msk [vmem:[#allocation2] sm:$0xff] %vm165_vm3, %v1512_v42 }
 0xf39   :  { %v1528_v44 = vld [vmem:[#allocation2] sm:$0xff] }
 0xf3a   :  { %v1503_v46 = vpop.xlane.xlu1 %1502  ;;  %v1530_v47 = vpack.c.bf16 %v1529_v45, %v1528_v44 }
 0xf3b   :  { %2812 = vrcp.f32 %v1503_v46 }
 0xf3c   :  { %2633 = vmatmul.mubr.msk.bf16.vlgmr.msra.gmra.mrb[40].mxu1 %vm165_vm3, %v1530_v47 }
 0xf3d   :  { %2643 = vmatpush3.bf16.msra.mxu1 %v1638_v49  ;;  %2644 = vmatprep.mubr.msk.bf16.mxu1 %vm2863_vm0, %v2862_v1 }
 0xf3e   :  { %2654 = vmatprep.subr.bf16.mxu1 %v2862_v1  ;;  %v1834_v63 = vpop.permute.xlu1 %1833 }
 0xf45   :  { %v2813_v51 = vpop.eup %2812 }
 0xf46   :  { %v1519_v52 = vmul.f32 %v2813_v51, %v3304_v14 }
 0xf48   :  { %1527 = vst.msk [vmem:[#allocation2 + $0x38] sm:$0xff] %vm165_vm3, %v1519_v52  ;;  %v1935_v52 = vrot.slane %v3220_v60, %v3116_v35 }
 0xf4f   :  { %v1831_v5 = vld [vmem:[#allocation2 + $0x38] sm:$0xff] }
 0xf50   :  { %v1832_v12 = vpack.c.bf16 %v1831_v5, %v1830_v10 }
 0xfda   :  { %v1624_v55 = vpop.f32.mrb[40].mxu0 }
 0xfdb   :  { %v2640_v56 = vpop.f32.mrb[41].mxu0 }
 0xfdc   :  { %v1627_v57 = vpop.f32.mrb[42].mxu0 }
 0xfdd   :  { %v1631_v58 = vpack.c.bf16 %v1627_v57, %v1624_v55  ;;  %v2641_v4 = vpop.f32.mrb[43].mxu0 }
 0xfdf   :  { %2645 = vmatmul.mubr.msk.bf16.vlgmr.msra.gmra.mrb[44].mxu1 %vm113_vm2, %v1631_v58 }
 0xfe0   :  { %2655 = vmatpush3.bf16.msra.mxu1 %v1732_v11  ;;  %2656 = vmatprep.mubr.msk.bf16.mxu1 %vm2863_vm0, %v2862_v1 }
 0xfe1   :  { %2666 = vmatprep.subr.bf16.mxu1 %v2862_v1 }
 0xfe7   :  { %2657 = vmatmul.mubr.msk.bf16.vlgmr.msra.gmra.mrb[48].mxu1 %vm165_vm3, %v1730_v62 }
 0xfe8   :  { %2667 = vmatpush3.bf16.msra.mxu1 %v1834_v63  ;;  %2668 = vmatprep.mubr.msk.bf16.mxu1 %vm2863_vm0, %v2862_v1 }
 0xfe9   :  { %2678 = vmatprep.subr.bf16.mxu1 %v2862_v1 }
 0xfef   :  { %2669 = vmatmul.mubr.msk.bf16.vlgmr.msra.gmra.mrb[52].mxu1 %vm165_vm3, %v1832_v12 }
 0xff0   :  { %2682 = vmatprep.mubr.msk.bf16.mxu1 %vm2863_vm0, %v2862_v1 }
0x100f   :  { %v1571_v14 = vpop.f32.mrb[40].mxu1 }
0x1010   :  { %v2634_v15 = vpop.f32.mrb[41].mxu1 }
0x1011   :  { %v1574_v36 = vpop.f32.mrb[42].mxu1 }
0x1012   :  { %v1578_v16 = vpack.c.bf16 %v1574_v36, %v1571_v14  ;;  %v2635_v19 = vpop.f32.mrb[43].mxu1 }
0x1014   :  { %2651 = vmatmul.mubr.msk.bf16.vlgmr.msra.gmra.mrb[44].mxu0 %vm113_vm2, %v1578_v16 }
0x1015   :  { %2662 = vmatprep.mubr.msk.bf16.mxu0 %vm2863_vm0, %v2862_v1  ;;  %2661 = vmatpush3.bf16.msra.mxu0 %v1785_v21 }
0x1016   :  { %2672 = vmatprep.subr.bf16.mxu0 %v2862_v1 }
0x10b2   :  { %v1674_v22 = vpop.f32.mrb[44].mxu1 }
0x10b3   :  { %v2646_v23 = vpop.f32.mrb[45].mxu1 }
0x10b4   :  { %v1677_v24 = vpop.f32.mrb[46].mxu1 }
0x10b5   :  { %v2647_v25 = vpop.f32.mrb[47].mxu1 }
0x10ba   :  { %v1771_v13 = vpop.f32.mrb[48].mxu1 }
0x10bb   :  { %v2658_v27 = vpop.f32.mrb[49].mxu1 }
0x10bc   :  { %v1774_v17 = vpop.f32.mrb[50].mxu1  ;;  %v3383_v27 = vld [vmem:[%s3476_s7 + $0x18] sm:$0x7] }
0x10bd   :  { %v1778_v28 = vpack.c.bf16 %v1774_v17, %v1771_v13  ;;  %v2659_v30 = vpop.f32.mrb[51].mxu1  ;;  %v1969_v13 = vrot.slane %v3220_v60, %v884_v0 }
0x10bf   :  { %2663 = vmatmul.mubr.msk.bf16.vlgmr.msra.gmra.mrb[48].mxu0 %vm113_vm2, %v1778_v28  ;;  %v1975_v28 = vrot.slane %v3220_v60, %v890_v2 }
0x10c0   :  { %2673 = vmatpush3.bf16.msra.mxu0 %v1887_v31  ;;  %2674 = vmatprep.mubr.msk.bf16.mxu0 %vm2863_vm0, %v2862_v1  ;;  %v1981_v31 = vrot.slane %v3383_v27, %v3132_v6 }
0x10c1   :  { %2686 = vmatprep.subr.bf16.mxu0 %v2862_v1 }
0x10c2   :  { %v1873_v32 = vpop.f32.mrb[52].mxu1 }
0x10c3   :  { %v2670_v33 = vpop.f32.mrb[53].mxu1 }
0x10c4   :  { %v1876_v34 = vpop.f32.mrb[54].mxu1 }
0x10c5   :  { %v1880_v9 = vpack.c.bf16 %v1876_v34, %v1873_v32  ;;  %v2671_v37 = vpop.f32.mrb[55].mxu1 }
0x10c7   :  { %2675 = vmatmul.mubr.msk.bf16.vlgmr.msra.gmra.mrb[52].mxu0 %vm113_vm2, %v1880_v9 }
0x10c8   :  { %2694 = vmatprep.mubr.msk.bf16.mxu0 %vm2863_vm0, %v2862_v1 }
0x10e7   :  { %v1721_v38 = vpop.f32.mrb[44].mxu0 }
0x10e8   :  { %v1722_v39 = vadd.f32 %v1721_v38, %v1674_v22  ;;  %v2652_v40 = vpop.f32.mrb[45].mxu0 }
0x10e9   :  { %v1724_v41 = vpop.f32.mrb[46].mxu0 }
0x10ea   :  { %v1725_v42 = vadd.f32 %v1724_v41, %v1677_v24  ;;  %v2653_v43 = vpop.f32.mrb[47].mxu0 }
0x1192   :  { %v1821_v44 = vpop.f32.mrb[48].mxu0 }
0x1193   :  { %v1828_v45 = vadd.f32 %v1821_v44, %v1722_v39  ;;  %v2664_v46 = vpop.f32.mrb[49].mxu0 }
0x1194   :  { %v1824_v47 = vpop.f32.mrb[50].mxu0 }
0x1195   :  { %v1829_v49 = vadd.f32 %v1824_v47, %v1725_v42  ;;  %v2665_v51 = vpop.f32.mrb[51].mxu0 }
0x119a   :  { %v1923_v53 = vpop.f32.mrb[52].mxu0 }
0x119b   :  { %v1930_v54 = vadd.f32 %v1923_v53, %v1828_v45  ;;  %v2676_v55 = vpop.f32.mrb[53].mxu0  ;;  %v2731_v53 = vld [vmem:[%s3474_s5 + $0x18] sm:$0xff]  }
0x119c   :  { %v1926_v56 = vpop.f32.mrb[54].mxu0  ;;  %v2733_v55 = vld [vmem:[%s3475_s6 + $0x28] sm:$0xff]  }
0x119d   :  { %v1936_v57 = vadd.f32 %v1935_v52, %v1930_v54  ;;  %v1931_v58 = vadd.f32 %v1926_v56, %v1829_v49  ;;  %v2677_v4 = vpop.f32.mrb[55].mxu0  ;;  %v2732_v54 = vld [vmem:[%s3475_s6 + $0x20] sm:$0xff]  }
0x119e   :  { %2687 = vmatpush3.bf16.msra.mxu0 %v2732_v54  ;;  %v2203_v54 = vrot.slane %v3383_v27, %v2963_v8 }
0x119f   :  { %v1937_v11 = vadd.f32 %v1935_v52, %v1931_v58  ;;  %v1938_v29 = vadd.f32 %v1936_v57, %v3208_v3  ;;  %v2730_v52 = vld [vmem:[%s3474_s5 + $0x10] sm:$0xff]   ;;  %2688 = vmatprep.subr.bf16.mxu0 %v2862_v1 }
0x11a0   :  { %2679 = vmatpush3.bf16.msra.mxu1 %v2730_v52 }
0x11a1   :  { %v1940_v61 = vsel %vm64_vm1, %v1938_v29, 0.0  ;;  %v1939_v62 = vadd.f32 %v1937_v11, %v3210_v59  ;;  %2680 = vmatprep.subr.bf16.mxu1 %v2862_v1 }
0x11a2   :  { %1941 = vadd.xlane.f32.xlu1 %v1940_v61  ;;  %2689 = vmatpush3.bf16.msra.mxu0 %v2733_v55 }
0x11a3   :  { %v1943_v63 = vsel %vm64_vm1, %v1939_v62, 0.0  ;;  %2690 = vmatprep.subr.bf16.mxu0 %v2862_v1 }
0x11a4   :  { %1944 = vadd.xlane.f32.xlu0 %v1943_v63  ;;  %2681 = vmatpush3.bf16.msra.mxu1 %v2731_v53 }
0x11a5   :  { %2698 = vmatprep.subr.bf16.mxu1 %v2862_v1 }
0x122f   :  { %v1942_v5 = vpop.xlane.xlu1 %1941 }
0x1230   :  { %v1946_v10 = vmul.f32 0.03125, %v1942_v5 }
0x1231   :  { %v1945_v12 = vpop.xlane.xlu0 %1944 }
0x1232   :  { %v1948_v14 = vsub.f32 %v1938_v29, %v1946_v10  ;;  %v1947_v15 = vmul.f32 0.03125, %v1945_v12 }
0x1234   :  { %v1949_v36 = vsub.f32 %v1939_v62, %v1947_v15  ;;  %v1950_v16 = vmul.f32 %v1948_v14, %v1948_v14  ;;  %v2013_v62 = vrot.slane %v3220_v60, %v928_v48  ;;  %v2734_v48 = vld [vmem:[%s3475_s6 + $0x30] sm:$0xff]  }
0x1235   :  { %2691 = vmatpush3.bf16.msra.mxu0 %v2734_v48 }
0x1236   :  { %v1952_v19 = vsel %vm64_vm1, %v1950_v16, 0.0  ;;  %v1951_v20 = vmul.f32 %v1949_v36, %v1949_v36  ;;  %2692 = vmatprep.subr.bf16.mxu0 %v2862_v1 }
0x1237   :  { %1953 = vadd.xlane.f32.xlu1 %v1952_v19 }
0x1238   :  { %v1955_v3 = vsel %vm64_vm1, %v1951_v20, 0.0  ;;  %v2031_v20 = vrot.slane %v3220_v60, %v3132_v6 }
0x123b   :  { %1956 = vadd.xlane.f32.xlu1 %v1955_v3 }
0x12c4   :  { %v1954_v21 = vpop.xlane.xlu1 %1953 }
0x12c5   :  { %v1958_v59 = vmul.f32 0.03125, %v1954_v21 }
0x12c7   :  { %v1960_v22 = vadd.f32 1e-05, %v1958_v59 }
0x12c8   :  { %v1957_v23 = vpop.xlane.xlu1 %1956 }
0x12c9   :  { %2814 = vrsqrt.f32 %v1960_v22  ;;  %v1959_v24 = vmul.f32 0.03125, %v1957_v23 }
0x12cb   :  { %v1961_v25 = vadd.f32 1e-05, %v1959_v24 }
0x12cd   :  { %2816 = vrsqrt.f32 %v1961_v25 }
0x12d3   :  { %v2815_v26 = vpop.eup %2814 }
0x12d4   :  { %v1964_v17 = vmul.f32 %v2815_v26, %v1948_v14  ;;  %v2019_v14 = vrot.slane %v3220_v60, %v934_v50  ;;  %v2735_v50 = vld [vmem:[%s3475_s6 + $0x38] sm:$0xff]  }
0x12d5   :  { %2693 = vmatpush3.bf16.msra.mxu0 %v2735_v50 }
0x12d6   :  { %v1970_v30 = vmul.f32 %v1969_v13, %v1964_v17  ;;  %v2103_v17 = vrot.slane %v3220_v60, %v1016_v18 }
0x12d7   :  { %v2817_v32 = vpop.eup %2816 }
0x12d8   :  { %v1976_v33 = vadd.f32 %v1975_v28, %v1970_v30  ;;  %v1965_v34 = vmul.f32 %v2817_v32, %v1949_v36 }
0x12da   :  { %v1982_v9 = vadd.f32 %v1981_v31, %v1976_v33  ;;  %v1971_v0 = vmul.f32 %v1969_v13, %v1965_v34 }
0x12dc   :  { %v1984_v37 = vsel %vm64_vm1, %v1982_v9, 0.0  ;;  %v1977_v38 = vadd.f32 %v1975_v28, %v1971_v0 }
0x12dd   :  { %1985 = vadd.xlane.f32.xlu0 %v1984_v37 }
0x12de   :  { %v1983_v39 = vadd.f32 %v1981_v31, %v1977_v38 }
0x12e0   :  { %v1987_v40 = vsel %vm64_vm1, %v1983_v39, 0.0 }
0x12e1   :  { %1988 = vadd.xlane.f32.xlu1 %v1987_v40 }
0x136a   :  { %v1986_v41 = vpop.xlane.xlu0 %1985 }
0x136b   :  { %v1990_v42 = vmul.f32 0.03125, %v1986_v41 }
0x136d   :  { %v1992_v2 = vsub.f32 %v1982_v9, %v1990_v42 }
0x136e   :  { %v1989_v43 = vpop.xlane.xlu1 %1988 }
0x136f   :  { %v1991_v44 = vmul.f32 0.03125, %v1989_v43  ;;  %v1994_v45 = vmul.f32 %v1992_v2, %v1992_v2 }
0x1371   :  { %v1993_v46 = vsub.f32 %v1983_v39, %v1991_v44  ;;  %v1996_v47 = vsel %vm64_vm1, %v1994_v45, 0.0  ;;  %v2736_v44 = vld [vmem:[%s3477_s8] sm:$0xff]   ;;  %v2737_v45 = vld [vmem:[%s3477_s8 + $0x8] sm:$0xff]  }
0x1372   :  { %1997 = vadd.xlane.f32.xlu0 %v1996_v47 }
0x1373   :  { %v1995_v49 = vmul.f32 %v1993_v46, %v1993_v46 }
0x1375   :  { %v1999_v51 = vsel %vm64_vm1, %v1995_v49, 0.0 }
0x1376   :  { %2000 = vadd.xlane.f32.xlu1 %v1999_v51 }
0x13ff   :  { %v1998_v56 = vpop.xlane.xlu0 %1997 }
0x1400   :  { %v2002_v57 = vmul.f32 0.03125, %v1998_v56 }
0x1402   :  { %v2004_v58 = vadd.f32 1e-05, %v2002_v57 }
0x1403   :  { %v2001_v4 = vpop.xlane.xlu1 %2000 }
0x1404   :  { %2818 = vrsqrt.f32 %v2004_v58  ;;  %v2003_v11 = vmul.f32 0.03125, %v2001_v4  ;;  %v2209_v58 = vrot.slane %v3383_v27, %v3116_v35 }
0x1406   :  { %v2005_v29 = vadd.f32 1e-05, %v2003_v11 }
0x1408   :  { %2820 = vrsqrt.f32 %v2005_v29 }
0x140e   :  { %v2819_v61 = vpop.eup %2818 }
0x140f   :  { %v2008_v63 = vmul.f32 %v2819_v61, %v1992_v2 }
0x1411   :  { %v2014_v10 = vmul.f32 %v2013_v62, %v2008_v63  ;;  %v2421_v63 = vld [vmem:[%s3478_s9] ss:$0 sm:$0xff] }
0x1412   :  { %v2821_v5 = vpop.eup %2820 }
0x1413   :  { %v2009_v12 = vmul.f32 %v2821_v5, %v1993_v46  ;;  %v2020_v36 = vadd.f32 %v2019_v14, %v2014_v10 }
0x1415   :  { %v2015_v15 = vmul.f32 %v2013_v62, %v2009_v12 }
0x1417   :  { %v2021_v16 = vadd.f32 %v2019_v14, %v2015_v15 }
0x1419   :  { %v2022_v19 = vpack.c.bf16 %v2021_v16, %v2020_v36 }
0x141b   :  { %2683 = vmatmul.mubr.msk.bf16.vlgmr.msra.gmra.mrb[56].mxu1 %vm64_vm1, %v2022_v19 }
0x141c   :  { %2702 = vmatprep.mubr.msk.bf16.mxu1 %vm2863_vm0, %v2862_v1  ;;  %2699 = vmatpush3.bf16.msra.mxu1 %v2736_v44 }
0x141d   :  { %2700 = vmatprep.subr.bf16.mxu1 %v2862_v1 }
0x1420   :  { %2701 = vmatpush3.bf16.msra.mxu1 %v2737_v45 }
0x14ee   :  { %v2081_v3 = vpop.f32.mrb[56].mxu1 }
0x14ef   :  { %v2082_v21 = vadd.f32 %v2081_v3, %v2031_v20  ;;  %v2684_v59 = vpop.f32.mrb[57].mxu1  ;;  %v2280_v3 = vld [vmem:[%s3471_s2] sm:$0xff] }
0x14f0   :  { %v2084_v22 = vpop.f32.mrb[58].mxu1 }
0x14f1   :  { %v2085_v23 = vadd.f32 %v2084_v22, %v2031_v20  ;;  %v2685_v24 = vpop.f32.mrb[59].mxu1  ;;  %v2088_v25 = vmax.f32 %v2082_v21, 0.0  ;;  %v2281_v21 = vld [vmem:[%s3471_s2 + $0x8] sm:$0xff]  ;;  %s2875_s2 = smov [#allocation3]  }
0x14f2   :  { %s2342_s28 = sshll.u32 %s2875_s2, 4  ;;  %s2343_s28 = int_to_ptr.vmem [resolvable:$true] %s2342_s28 }
0x14f3   :  { %v2089_v13 = vmax.f32 %v2085_v23, 0.0  ;;  %s2838_s13 = scalar_lea.vmem %s2343_s28, 16  ;;  %s2842_s14 = scalar_lea.vmem %s2343_s28, 32 }
0x14f4   :  { %p2839_p0 = scmp.ne.s32.totalorder %s2343_s28, %s2838_s13  ;;  %p2843_p1 = scmp.lt.s32.totalorder %s2343_s28, %s2343_s28 }
0x14f5   :  { %v2090_v26 = vpack.c.bf16 %v2089_v13, %v2088_v25  ;;  %p2844_p2 = scmp.lt.s32.totalorder %s2842_s14, %s2838_s13 }
0x14f7   :  { %2695 = vmatmul.mubr.msk.bf16.vlgmr.msra.gmra.mrb[56].mxu0 %vm1042_vm5, %v2090_v26  ;;  %p2845_p3 = por %p2844_p2, %p2843_p1 }
0x14f9   :  { %p2846_p4 = pnand %p2845_p3, %p2839_p0 }
0x15ca   :  { %v2165_v28 = vpop.f32.mrb[56].mxu0 }
0x15cb   :  { %v2166_v30 = vadd.f32 %v2165_v28, %v2103_v17  ;;  %v2696_v31 = vpop.f32.mrb[57].mxu0 }
0x15cc   :  { %v2168_v32 = vpop.f32.mrb[58].mxu0 }
0x15cd   :  { %v2169_v6 = vadd.f32 %v2168_v32, %v2103_v17  ;;  %v2697_v33 = vpop.f32.mrb[59].mxu0  ;;  %v2172_v34 = vadd.f32 %v2166_v30, %v2020_v36 }
0x15cf   :  { %v2174_v9 = vsel %vm64_vm1, %v2172_v34, 0.0  ;;  %v2173_v0 = vadd.f32 %v2169_v6, %v2021_v16 }
0x15d0   :  { %2175 = vadd.xlane.f32.xlu0 %v2174_v9 }
0x15d1   :  { %v2177_v37 = vsel %vm64_vm1, %v2173_v0, 0.0 }
0x15d2   :  { %2178 = vadd.xlane.f32.xlu1 %v2177_v37 }
0x165d   :  { %v2176_v38 = vpop.xlane.xlu0 %2175 }
0x165e   :  { %v2180_v39 = vmul.f32 0.03125, %v2176_v38 }
0x165f   :  { %v2179_v40 = vpop.xlane.xlu1 %2178 }
0x1660   :  { %v2182_v7 = vsub.f32 %v2172_v34, %v2180_v39  ;;  %v2181_v41 = vmul.f32 0.03125, %v2179_v40 }
0x1662   :  { %v2183_v18 = vsub.f32 %v2173_v0, %v2181_v41  ;;  %v2184_v60 = vmul.f32 %v2182_v7, %v2182_v7 }
0x1664   :  { %v2186_v42 = vsel %vm64_vm1, %v2184_v60, 0.0  ;;  %v2185_v2 = vmul.f32 %v2183_v18, %v2183_v18 }
0x1665   :  { %2187 = vadd.xlane.f32.xlu0 %v2186_v42 }
0x1666   :  { %v2189_v43 = vsel %vm64_vm1, %v2185_v2, 0.0 }
0x1667   :  { %2190 = vadd.xlane.f32.xlu1 %v2189_v43 }
0x16f2   :  { %v2188_v46 = vpop.xlane.xlu0 %2187 }
0x16f3   :  { %v2192_v47 = vmul.f32 0.03125, %v2188_v46 }
0x16f4   :  { %v2191_v49 = vpop.xlane.xlu1 %2190 }
0x16f5   :  { %v2194_v51 = vadd.f32 1e-05, %v2192_v47  ;;  %v2193_v52 = vmul.f32 0.03125, %v2191_v49 }
0x16f7   :  { %2822 = vrsqrt.f32 %v2194_v51  ;;  %v2195_v53 = vadd.f32 1e-05, %v2193_v52 }
0x16f9   :  { %2824 = vrsqrt.f32 %v2195_v53 }
0x1701   :  { %v2823_v55 = vpop.eup %2822 }
0x1702   :  { %v2198_v56 = vmul.f32 %v2823_v55, %v2182_v7 }
0x1703   :  { %v2825_v57 = vpop.eup %2824 }
0x1704   :  { %v2204_v4 = vmul.f32 %v2203_v54, %v2198_v56  ;;  %v2199_v1 = vmul.f32 %v2825_v57, %v2183_v18 }
0x1706   :  { %v2205_v11 = vmul.f32 %v2203_v54, %v2199_v1  ;;  %v2210_v29 = vadd.f32 %v2209_v58, %v2204_v4 }
0x1708   :  { %v2211_v61 = vadd.f32 %v2209_v58, %v2205_v11 }
0x170a   :  { %v2212_v62 = vpack.c.bf16 %v2211_v61, %v2210_v29 }
0x170c   :  { %2703 = vmatmul.mubr.msk.bf16.vlgmr.msra.gmra.mrb[60].mxu1 %vm64_vm1, %v2212_v62 }
0x17df   :  { %v2273_v5 = vpop.f32.mrb[60].mxu1 }
0x17e0   :  { %v2274_v8 = vadd.f32 %v2421_v63, %v2273_v5  ;;  %v2704_v10 = vpop.f32.mrb[61].mxu1 }
0x17e1   :  { %v2276_v12 = vpop.f32.mrb[62].mxu1 }
0x17e2   :  { %v2277_v14 = vadd.f32 %v2421_v63, %v2276_v12  ;;  %2286 = vmax.xlane.f32.xlu0 %v2274_v8  ;;  %v2705_v15 = vpop.f32.mrb[63].mxu1  ;;  %v2306_v59 = vmul.f32 %v2280_v3, %v2274_v8 }
0x17e4   :  { %2288 = vmax.xlane.f32.xlu1 %v2277_v14  ;;  %v2307_v22 = vmul.f32 %v2281_v21, %v2277_v14 }
0x186f   :  { %v2287_v35 = vpop.xlane.xlu0 %2286 }
0x1870   :  { %v2290_v27 = vsub.f32 %v2274_v8, %v2287_v35 }
0x1871   :  { %v2289_v36 = vpop.xlane.xlu1 %2288 }
0x1872   :  { %v2292_v16 = vmul.f32 1.442695, %v2290_v27  ;;  %v2291_v19 = vsub.f32 %v2277_v14, %v2289_v36 }
0x1874   :  { %2826 = vpow2.f32 %v2292_v16  ;;  %v2294_v48 = vmul.f32 1.442695, %v2291_v19 }
0x1876   :  { %2828 = vpow2.f32 %v2294_v48 }
0x187e   :  { %v2827_v50 = vpop.eup %2826 }
0x187f   :  { %2296 = vadd.xlane.f32.xlu0 %v2827_v50 }
0x1880   :  { %v2829_v20 = vpop.eup %2828 }
0x1881   :  { %2298 = vadd.xlane.f32.xlu1 %v2829_v20 }
0x1883   :  { %2282 = vadd.xlane.f32.xlu0 %v2280_v3 }
0x1885   :  { %2284 = vadd.xlane.f32.xlu1 %v2281_v21 }
0x1887   :  { %2308 = vadd.xlane.f32.xlu0 %v2306_v59 }
0x1889   :  { %2310 = vadd.xlane.f32.xlu1 %v2307_v22 }
0x190c   :  { %v2297_v23 = vpop.xlane.xlu0 %2296 }
0x190d   :  { %2830 = vlog2.f32 %v2297_v23 }
0x190e   :  { %v2299_v24 = vpop.xlane.xlu1 %2298 }
0x190f   :  { %2832 = vlog2.f32 %v2299_v24 }
0x1910   :  { %v2283_v25 = vpop.xlane.xlu0 %2282 }
0x1911   :  { %vm2312_vm6 = vcmp.gt.f32.partialorder %v2283_v25, 0.0 }
0x1912   :  { %v2285_v13 = vpop.xlane.xlu1 %2284 }
0x1913   :  { %v2325_v26 = vadd.f32 %v2285_v13, %v2283_v25  ;;  %vm2313_vm7 = vcmp.gt.f32.partialorder %v2285_v13, 0.0 }
0x1914   :  { %v2309_v0 = vpop.xlane.xlu0 %2308 }
0x1915   :  { %v2326_v17 = vrot.slane %v2325_v26, 4 }
0x1916   :  { %v2311_v40 = vpop.xlane.xlu1 %2310 }
0x1917   :  { %v2831_v28 = vpop.eup %2830  ;;  %v2327_v30 = vadd.f32 %v2326_v17, %v2325_v26 }
0x1918   :  { %v2301_v31 = vmul.f32 0.6931472, %v2831_v28 }
0x1919   :  { %v2833_v32 = vpop.eup %2832  ;;  %v2328_v6 = vrot.slane %v2327_v30, 2 }
0x191a   :  { %v2303_v33 = vmul.f32 0.6931472, %v2833_v32  ;;  %v2304_v34 = vadd.f32 %v2301_v31, %v2287_v35 }
0x191b   :  { %v2329_v9 = vadd.f32 %v2328_v6, %v2327_v30 }
0x191c   :  { %v2314_v37 = vsub.f32 %v2304_v34, %v2309_v0  ;;  %v2305_v38 = vadd.f32 %v2303_v33, %v2289_v36 }
0x191d   :  { %v2330_v39 = vrot.slane %v2329_v9, 1 }
0x191e   :  { %v2315_v7 = vsub.f32 %v2305_v38, %v2311_v40  ;;  %v2316_v18 = vsel %vm2312_vm6, %v2314_v37, 0.0 }
0x191f   :  { %v2331_v41 = vadd.f32 %v2330_v39, %v2329_v9 }
0x1920   :  { %v2317_v60 = vsel %vm2313_vm7, %v2315_v7, 0.0 }
0x1921   :  { %v2318_v42 = vadd.f32 %v2317_v60, %v2316_v18  ;;  %2834 = vrcp.f32 %v2331_v41 }
0x1923   :  { %v2319_v2 = vrot.slane %v2318_v42, 4 }
0x1925   :  { %v2320_v43 = vadd.f32 %v2319_v2, %v2318_v42 }
0x1927   :  { %v2321_v44 = vrot.slane %v2320_v43, 2 }
0x1929   :  { %v2322_v45 = vadd.f32 %v2321_v44, %v2320_v43 }
0x192b   :  { %v2323_v46 = vrot.slane %v2322_v45, 1  ;;  %v2835_v49 = vpop.eup %2834 }
0x192d   :  { %v2324_v47 = vadd.f32 %v2323_v46, %v2322_v45 }
0x192f   :  { %v2333_v51 = vmul.f32 %v2835_v49, %v2324_v47 }
0x1931   :  { %2335 = vst.msk [vmem:[#allocation3] sm:$0x1] %vm2334_vm8, %v2333_v51 }
0x1932   :  { %2849 = shalt.err (!%p2846_p4)
}
0x1933   :  { %s2850_s4 = scalar_lea.hbm %s3479_s10, 16 }
0x1934   :  { %p2851_p5 = scmp.ne.s32.totalorder %s3479_s10, %s2850_s4  ;;  %p2854_p6 = scmp.lt.u32.totalorder %s2850_s4, %s3479_s10 }
0x1936   :  { %p2856_p7 = pnand %p2854_p6, %p2851_p5 }
0x1938   :  { %2859 = shalt.err (!%p2856_p7)
}
0x1939   :  { %2345 = dma.vmem_to_hbm [thread:$0]  %s2343_s28, 16, %s3479_s10, [#allocation4]  }
0x193a   :  { %2860 = dma.done.wait [#allocation4], 16  }
0x193b   :  { %2861 = vsyncadd [#allocation4], 4294967280 }
0x193c   :  { %2349 = vsyncpa [#allocation4], 1 }

</bundles_post_ra>
